<compile_context>
chip_gen: v6e
topology: v6e:2x2x1
jax: 0.10.0
libtpu: 0.0.40
codegen_flags: <defaults>
</compile_context>

<pallas_src>
import jax
import jax.numpy as jnp
from jax.experimental import pallas as pl
from jax.experimental.pallas import tpu as pltpu


def daigt_head_kernel(hid_ref, mask_ref, w_ref, b_ref, out_ref, acc_ref, msum_ref):
    # hid_ref  : [bB, bS, H] bf16/f32  block of last_hidden_state
    # mask_ref : [bB, bS]    f32       block of attention_mask
    # w_ref    : [1, H]      f32       classifier weight, lane-dense
    # b_ref    : [1, 1]      f32       classifier bias (SMEM)
    # out_ref  : [bB, 1]     f32       logits (written on last S-tile)
    # acc_ref  : [bB, 1]     f32       running sum of w-projected masked hidden
    # msum_ref : [bB, 1]     f32       running sum of mask
    s_idx = pl.program_id(1)

    @pl.when(s_idx == 0)
    def _init():
        acc_ref[...] = jnp.zeros_like(acc_ref)
        msum_ref[...] = jnp.zeros_like(msum_ref)

    hid = hid_ref[...].astype(jnp.float32)            # [bB, bS, H] (f32 accumulate)
    mask = mask_ref[...]                              # [bB, bS]
    w = w_ref[...]                                    # [1, H]

    # Fold Linear(H, 1) into the pooling: per-token projection on VPU + XLU
    # lane-reduce instead of an N=1 MXU matmul.
    proj = jnp.sum(hid * w[None, :, :], axis=-1)                      # [bB, bS]
    acc_ref[...] += jnp.sum(proj * mask, axis=-1, keepdims=True)      # [bB, 1]
    msum_ref[...] += jnp.sum(mask, axis=-1, keepdims=True)            # [bB, 1]

    @pl.when(s_idx == pl.num_programs(1) - 1)
    def _finalize():
        # sum_mask = clamp(sum(mask), 1e-9); logits = pooled @ w + b
        denom = jnp.maximum(msum_ref[...], 1e-9)
        out_ref[...] = (acc_ref[...] / denom + b_ref[0, 0]).astype(out_ref.dtype)


def _choose_block_s(S, H, block_b, itemsize, budget_bytes):
    """Largest multiple of 128 dividing S whose hidden block fits the budget."""
    candidates = [s for s in range(128, S + 1, 128) if S % s == 0]
    if not candidates:
        return S  # small S: full extent (always a legal block shape)
    fitting = [s for s in candidates if block_b * s * H * itemsize <= budget_bytes]
    return max(fitting) if fitting else min(candidates)


def daigt_forward_head(last_hidden_state, attention_mask, w, b,
                       *, block_s=None, block_b=None,
                       vmem_block_budget_bytes=6 << 20):
    """Masked mean pooling + Linear(H, 1), fused in one tiled Pallas kernel.

    Per-buffer budget defaults to 6 MiB so that double-buffered hidden tiles
    stay under v5e's 16 MiB default scoped VMEM (and comfortably under the
    32 MiB defaults on v6e/v7x); bump it on v6e for a better roofline fraction.
    """
    B, S, H = last_hidden_state.shape
    hid = last_hidden_state                      # keep native dtype (bf16 halves HBM bytes)
    mask = attention_mask.astype(jnp.float32)
    w2d = w.reshape(1, H).astype(jnp.float32)    # lane-dense weight
    b2d = b.reshape(1, 1).astype(jnp.float32)

    if block_b is None:
        block_b = 8 if (B % 8 == 0) else B
    if block_s is None:
        block_s = _choose_block_s(S, H, block_b, hid.dtype.itemsize,
                                  vmem_block_budget_bytes)
    assert B % block_b == 0 and S % block_s == 0, (B, block_b, S, block_s)

    grid = (B // block_b, S // block_s)

    return pl.pallas_call(
        daigt_head_kernel,
        out_shape=jax.ShapeDtypeStruct((B, 1), jnp.float32),
        grid_spec=pltpu.PrefetchScalarGridSpec(
            num_scalar_prefetch=0,
            grid=grid,
            in_specs=[
                pl.BlockSpec((block_b, block_s, H), lambda bi, si: (bi, si, 0)),
                pl.BlockSpec((block_b, block_s), lambda bi, si: (bi, si)),
                pl.BlockSpec((1, H), lambda bi, si: (0, 0)),
                pl.BlockSpec(memory_space=pltpu.MemorySpace.SMEM),
            ],
            out_specs=pl.BlockSpec((block_b, 1), lambda bi, si: (bi, 0)),
            scratch_shapes=[
                pltpu.VMEM((block_b, 1), jnp.float32),   # partial logit accumulator
                pltpu.VMEM((block_b, 1), jnp.float32),   # mask-sum accumulator
            ],
        ),
        compiler_params=pltpu.CompilerParams(
            # batch tiles shard across TensorCores (v7x megacore); the
            # S-reduction axis is last and "arbitrary".
            dimension_semantics=("parallel", "arbitrary"),
        ),
    )(hid, mask, w2d, b2d)


def synthetic_backbone(input_ids, emb_table):
    # Deterministic stand-in for AutoModel(...)[0] -> last_hidden_state [B, S, H] (bf16).
    return emb_table[input_ids]


def daigt_model_forward(input_ids, attention_mask, params, **kwargs):
    hidden = synthetic_backbone(input_ids, params["emb_table"])
    return daigt_forward_head(hidden, attention_mask,
                              params["cls_w"], params["cls_b"], **kwargs)


if __name__ == "__main__":
    B, S, H, V = 4, 256, 128, 512  # batch, seq_len, hidden_size, vocab

    key = jax.random.PRNGKey(0)
    k_ids, k_emb, k_w = jax.random.split(key, 3)

    # Deterministic synthetic inputs / parameters.
    input_ids = jax.random.randint(k_ids, (B, S), 0, V, dtype=jnp.int32)
    lengths = jnp.array([S, 200, 128, 64], dtype=jnp.int32)
    attention_mask = (jnp.arange(S)[None, :] < lengths[:, None]).astype(jnp.int32)

    params = {
        "emb_table": (jax.random.normal(k_emb, (V, H), jnp.float32) * 0.02
                      ).astype(jnp.bfloat16),
        "cls_w": jax.random.normal(k_w, (H, 1), jnp.float32) * 0.02,
        "cls_b": jnp.zeros((1,), jnp.float32),
    }

    # block_s=128 forces 2 S-tiles so the accumulate/finalize path is exercised.
    logits = daigt_model_forward(input_ids, attention_mask, params, block_s=128)
    logits = jax.block_until_ready(logits)
    assert logits.shape == (B, 1), logits.shape

    # Pure-JAX reference of the module's forward (pooling + classifier),
    # computed in f32 from the same bf16 hidden states.
    hidden = synthetic_backbone(input_ids, params["emb_table"]).astype(jnp.float32)
    mask_f = attention_mask.astype(jnp.float32)
    sum_emb = jnp.sum(hidden * mask_f[:, :, None], axis=1)
    sum_mask = jnp.maximum(mask_f.sum(axis=1, keepdims=True), 1e-9)
    ref = (sum_emb / sum_mask) @ params["cls_w"] + params["cls_b"]

    assert jnp.allclose(logits, ref, atol=1e-4, rtol=1e-4), (logits, ref)
    print("KERNEL_OK")
</pallas_src>

<mosaic_0001>
module attributes {stable_mosaic.version = 11 : i64} {
  func.func @daigt_head_kernel(%arg0: i32, %arg1: i32, %arg2: memref<4x128x128xbf16, #tpu.memory_space<vmem>>, %arg3: memref<4x128xf32, #tpu.memory_space<vmem>>, %arg4: memref<1x128xf32, #tpu.memory_space<vmem>>, %arg5: memref<1x1xf32, #tpu.memory_space<smem>>, %arg6: memref<4x1xf32, #tpu.memory_space<vmem>>, %arg7: memref<4x1xf32, #tpu.memory_space<vmem>>, %arg8: memref<4x1xf32, #tpu.memory_space<vmem>>) attributes {dimension_semantics = [#tpu.dimension_semantics<parallel>, #tpu.dimension_semantics<arbitrary>], iteration_bounds = array<i64: 1, 2>, scalar_prefetch = 0 : i64, scratch_operands = 2 : i64, tpu.core_type = #tpu.core_type<tc>, window_params = [{transform_indices = @transform_0, window_bounds = array<i64: 4, 128, 128>}, {transform_indices = @transform_1, window_bounds = array<i64: 4, 128>}, {pipeline_mode = #tpu.pipeline_mode<synchronous>, transform_indices = @transform_2, window_bounds = array<i64: 1, 128>}, {transform_indices = @transform_3, window_bounds = array<i64: 1, 1>}, {transform_indices = @transform_4, window_bounds = array<i64: 4, 1>}]} {
    %c0_i32 = arith.constant 0 : i32
    %0 = arith.cmpi eq, %arg1, %c0_i32 : i32
    %1 = arith.extui %0 : i1 to i32
    %c0_i32_0 = arith.constant 0 : i32
    %2 = arith.cmpi ne, %1, %c0_i32_0 : i32
    scf.if %2 {
      %cst_18 = arith.constant 0.000000e+00 : f32
      %25 = vector.broadcast %cst_18 : f32 to vector<4x1xf32>
      %c0_19 = arith.constant 0 : index
      %c0_20 = arith.constant 0 : index
      %26 = vector.load %arg7[%c0_19, %c0_20] : memref<4x1xf32, #tpu.memory_space<vmem>>, vector<4x1xf32>
      tpu.vector_store %arg7[%c0_19, %c0_20], %25 {strides = array<i32>} : memref<4x1xf32, #tpu.memory_space<vmem>>, vector<4x1xf32>,
      %cst_21 = arith.constant 0.000000e+00 : f32
      %27 = vector.broadcast %cst_21 : f32 to vector<4x1xf32>
      %c0_22 = arith.constant 0 : index
      %c0_23 = arith.constant 0 : index
      %28 = vector.load %arg8[%c0_22, %c0_23] : memref<4x1xf32, #tpu.memory_space<vmem>>, vector<4x1xf32>
      tpu.vector_store %arg8[%c0_22, %c0_23], %27 {strides = array<i32>} : memref<4x1xf32, #tpu.memory_space<vmem>>, vector<4x1xf32>,
    } else {
    }
    %c0 = arith.constant 0 : index
    %c0_1 = arith.constant 0 : index
    %c0_2 = arith.constant 0 : index
    %3 = vector.load %arg2[%c0, %c0_1, %c0_2] : memref<4x128x128xbf16, #tpu.memory_space<vmem>>, vector<4x128x128xbf16>
    %4 = arith.extf %3 : vector<4x128x128xbf16> to vector<4x128x128xf32>
    %c0_3 = arith.constant 0 : index
    %c0_4 = arith.constant 0 : index
    %5 = vector.load %arg3[%c0_3, %c0_4] : memref<4x128xf32, #tpu.memory_space<vmem>>, vector<4x128xf32>
    %c0_5 = arith.constant 0 : index
    %c0_6 = arith.constant 0 : index
    %6 = vector.load %arg4[%c0_5, %c0_6] : memref<1x128xf32, #tpu.memory_space<vmem>>, vector<1x128xf32>
    %7 = vector.shape_cast %6 : vector<1x128xf32> to vector<1x1x128xf32>
    %8 = vector.broadcast %7 : vector<1x1x128xf32> to vector<4x128x128xf32>
    %9 = arith.mulf %4, %8 : vector<4x128x128xf32>
    %cst = arith.constant dense<0.000000e+00> : vector<4x128xf32>
    %10 = vector.multi_reduction <add>, %9, %cst [2] : vector<4x128x128xf32> to vector<4x128xf32>
    %c0_7 = arith.constant 0 : index
    %c0_8 = arith.constant 0 : index
    %11 = vector.load %arg7[%c0_7, %c0_8] : memref<4x1xf32, #tpu.memory_space<vmem>>, vector<4x1xf32>
    %12 = arith.mulf %10, %5 : vector<4x128xf32>
    %cst_9 = arith.constant dense<0.000000e+00> : vector<4xf32>
    %13 = vector.multi_reduction <add>, %12, %cst_9 [1] : vector<4x128xf32> to vector<4xf32>
    %14 = vector.shape_cast %13 : vector<4xf32> to vector<4x1xf32>
    %15 = arith.addf %11, %14 : vector<4x1xf32>
    %c0_10 = arith.constant 0 : index
    %c0_11 = arith.constant 0 : index
    %16 = vector.load %arg7[%c0_10, %c0_11] : memref<4x1xf32, #tpu.memory_space<vmem>>, vector<4x1xf32>
    tpu.vector_store %arg7[%c0_10, %c0_11], %15 {strides = array<i32>} : memref<4x1xf32, #tpu.memory_space<vmem>>, vector<4x1xf32>,
    %c0_12 = arith.constant 0 : index
    %c0_13 = arith.constant 0 : index
    %17 = vector.load %arg8[%c0_12, %c0_13] : memref<4x1xf32, #tpu.memory_space<vmem>>, vector<4x1xf32>
    %cst_14 = arith.constant dense<0.000000e+00> : vector<4xf32>
    %18 = vector.multi_reduction <add>, %5, %cst_14 [1] : vector<4x128xf32> to vector<4xf32>
    %19 = vector.shape_cast %18 : vector<4xf32> to vector<4x1xf32>
    %20 = arith.addf %17, %19 : vector<4x1xf32>
    %c0_15 = arith.constant 0 : index
    %c0_16 = arith.constant 0 : index
    %21 = vector.load %arg8[%c0_15, %c0_16] : memref<4x1xf32, #tpu.memory_space<vmem>>, vector<4x1xf32>
    tpu.vector_store %arg8[%c0_15, %c0_16], %20 {strides = array<i32>} : memref<4x1xf32, #tpu.memory_space<vmem>>, vector<4x1xf32>,
    %c1_i32 = arith.constant 1 : i32
    %22 = arith.cmpi eq, %arg1, %c1_i32 : i32
    %23 = arith.extui %22 : i1 to i32
    %c0_i32_17 = arith.constant 0 : i32
    %24 = arith.cmpi ne, %23, %c0_i32_17 : i32
    scf.if %24 {
      %c0_18 = arith.constant 0 : index
      %c0_19 = arith.constant 0 : index
      %25 = vector.load %arg8[%c0_18, %c0_19] : memref<4x1xf32, #tpu.memory_space<vmem>>, vector<4x1xf32>
      %cst_20 = arith.constant 9.99999971E-10 : f32
      %26 = vector.broadcast %cst_20 : f32 to vector<4x1xf32>
      %27 = arith.maximumf %25, %26 : vector<4x1xf32>
      %c0_21 = arith.constant 0 : index
      %c0_22 = arith.constant 0 : index
      %28 = vector.load %arg7[%c0_21, %c0_22] : memref<4x1xf32, #tpu.memory_space<vmem>>, vector<4x1xf32>
      %29 = arith.divf %28, %27 : vector<4x1xf32>
      %c0_23 = arith.constant 0 : index
      %c0_24 = arith.constant 0 : index
      %30 = memref.load %arg5[%c0_23, %c0_24] : memref<1x1xf32, #tpu.memory_space<smem>>
      %31 = vector.broadcast %30 : f32 to vector<4x1xf32>
      %32 = arith.addf %29, %31 : vector<4x1xf32>
      %c0_25 = arith.constant 0 : index
      %c0_26 = arith.constant 0 : index
      %33 = vector.load %arg6[%c0_25, %c0_26] : memref<4x1xf32, #tpu.memory_space<vmem>>, vector<4x1xf32>
      tpu.vector_store %arg6[%c0_25, %c0_26], %32 {strides = array<i32>} : memref<4x1xf32, #tpu.memory_space<vmem>>, vector<4x1xf32>,
    } else {
    }
    return
  }
  func.func @transform_0(%arg0: i32, %arg1: i32) -> (i32, i32, i32) {
    %c0_i32 = arith.constant 0 : i32
    %c0_i32_0 = arith.constant 0 : i32
    return %arg0, %arg1, %c0_i32 : i32, i32, i32
  }
  func.func @transform_1(%arg0: i32, %arg1: i32) -> (i32, i32) {
    %c0_i32 = arith.constant 0 : i32
    return %arg0, %arg1 : i32, i32
  }
  func.func @transform_2(%arg0: i32, %arg1: i32) -> (i32, i32) {
    %c0_i32 = arith.constant 0 : i32
    %c0_i32_0 = arith.constant 0 : i32
    %c0_i32_1 = arith.constant 0 : i32
    return %c0_i32, %c0_i32_0 : i32, i32
  }
  func.func @transform_3(%arg0: i32, %arg1: i32) -> (i32, i32) {
    %c0_i32 = arith.constant 0 : i32
    %c0_i32_0 = arith.constant 0 : i32
    %c0_i32_1 = arith.constant 0 : i32
    return %c0_i32, %c0_i32_0 : i32, i32
  }
  func.func @transform_4(%arg0: i32, %arg1: i32) -> (i32, i32) {
    %c0_i32 = arith.constant 0 : i32
    %c0_i32_0 = arith.constant 0 : i32
    return %arg0, %c0_i32 : i32, i32
  }
}

</mosaic_0001>

<bundles_post_ra>
// kernel: tpu_custom_call.1
= control target key start
LH: loop header
LB: loop body
LE: loop exit
PB: predicated region body
PF: predicated region fallthrough
CT: control target
= control target key end

     0   :  { %s2804_s0 = inlined_call_operand.hbm [shape: bf16[4,256,128], index: 0, kind: input, shape index: {}]   ;;  %s2805_s1 = inlined_call_operand.hbm [shape: f32[4,256], index: 1, kind: input, shape index: {}]   ;;  %s2806_s2 = inlined_call_operand.vmem [shape: f32[1,128], index: 2, kind: input, shape index: {}]   ;;  %s2807_s3 = inlined_call_operand.<no memory space> [shape: f32[1,1], index: 3, kind: input, shape index: {}]   ;;  %s2808_s4 = inlined_call_operand.vmem [shape: f32[4,1], index: 4, kind: output, shape index: {}]  }
   0x1   :  { %9 = sst [smem:[#allocation4]] %s2807_s3 }
   0x2   :  { %10 = vsyncpa [#allocation6], 0 }
   0x3   :  { %12 = vsyncpa [#allocation6 + $0x1], 0 }
   0x4   :  { %13 = vsyncpa [#allocation8], 0 }
   0x5   :  { %15 = vsyncpa [#allocation8 + $0x1], 0  ;;  %s2139_s17 = smov 0   ;;  %s2141_s18 = smov 0  }
   0x6   :  { %s2143_s19 = smov 0   ;;  %s2145_s20 = smov 0  }
   0x7   :  { %s2147_s21 = smov 0   ;;  %s2149_s22 = smov 0  }
   0x8 LB: > { %s1770_s3 = sadd.s32 4294967295, %s2100_s22   ;;  %s30_s23 = sadd.s32 1, %s2096_s21  ;;  %s2100_s22 = sphi %s2149_s22, %s21_s22   ;;  %s2096_s21 = sphi %s2147_s21, %s2852_s21   ;;  %s2092_s20 = sphi %s2145_s20, %s2851_s20   ;;  %s2088_s19 = sphi %s2143_s19, %s2850_s19   ;;  %s2084_s18 = sphi %s2141_s18, %s2849_s18   ;;  %s2080_s17 = sphi %s2139_s17, %s2848_s17  }
   0x9   : > { %p31_p0 = scmp.ge.s32.totalorder %s30_s23, 2  ;;  %s42_s24 = sadd.s32 1, %s2088_s19 }
   0xa   : > { %p49_p1 = scmp.ne.s32.totalorder %s2088_s19, %s2084_s18  ;;  %p50_p2 = scmp.eq.s32.totalorder %s2100_s22, 0 }
   0xb   : > { %s2854_s23 = smov (%p31_p0, %s30_s23), 0  ;;  %p55_p4 = scmp.ne.s32.totalorder %s2084_s18, %s2080_s17 }
   0xc   : > { %p2175_p3 = por %p50_p2, %p49_p1  ;;  %s38_s26 = ssub.s32 %s2096_s21, %s2854_s23 }
   0xd   : > { %p56_p5 = scmp.eq.s32.totalorder %s1770_s3, 0  ;;  %p40_p6 = scmp.eq.s32.totalorder %s38_s26, 0 }
   0xe   : > { %p1772_p8 = scmp.ge.s32.totalorder %s2100_s22, 2 }
   0xf   : > { %p2182_p7 = por %p56_p5, %p55_p4 }
  0x10   : > { %s2187_s28 = scalar_select %p40_p6, %s2088_s19, %s42_s24  }
  0x11   : > { %177 = sbr.rel (%p1772_p8) target bundleno = 49 (0x31), region = 24 }
  0x16   : > { %s2191_s29 = sand.u32 1, %s2088_s19   ;;  %s1789_s30 = sshll.u32 %s2096_s21, 10 }
  0x17   : > { %s1773_s5 = sshll.u32 %s2191_s29, 8  ;;  %s194_s8 = scalar_lea.hbm %s2804_s0, %s1789_s30 }
  0x18   : > { %s1949_s9 = scalar_select %p2175_p3, [#allocation0], [#allocation11] }
  0x19   : > { %s185_s10 = scalar_lea.vmem [#allocation5], %s1773_s5  ;;  %s2102_s13 = smov 2048  }
  0x1a   : > { %s207_s11 = sshll.u32 %s185_s10, 4  ;;  %s199_s12 = sld [smem:[%s1949_s9]]   ;;  %s208_s11 = int_to_ptr.vmem [resolvable:$true] %s207_s11 }
  0x1b   : > { %1950 = sst [smem:[#allocation10]] (%p2175_p3), %s2102_s13  ;;  %s2103_s14 = smov 1024  }
  0x1c   : > { %1951 = sst [smem:[#allocation10 + $0x1]] (%p2175_p3), %s2103_s14  ;;  %s2104_s15 = smov 16  }
  0x1d   : > { %1952 = sst [smem:[#allocation10 + $0x2]] (%p2175_p3), %s2104_s15  ;;  %s2105_s16 = smov 64  }
  0x1e   : > { %1953 = sst [smem:[#allocation10 + $0x3]] (%p2175_p3), %s2105_s16  ;;  %s2106_s3 = smov 4  }
  0x1f   : > { %1954 = sst [smem:[#allocation10 + $0x4]] (%p2175_p3), %s2105_s16  ;;  %s182_s26 = scalar_lea.sflag [#allocation6], %s2191_s29 }
  0x20   : > { %s1776_s17 = sshll.u32 %s199_s12, 26  ;;  %1955 = sst [smem:[#allocation10 + $0x5]] (%p2175_p3), %s2106_s3 }
  0x21   : > { %s1777_s24 = sadd.s32 134217728, %s1776_s17  ;;  %s2107_s30 = smov 131072  }
  0x22   : > { %1956 = dma.general (%p2175_p3), %s194_s8, 4096, %s208_s11, %s182_s26, %s2107_s30, [#allocation10], %s1777_s24, 0  }
  0x23   : > { %s1778_s5 = sshll.u32 %s2191_s29, 2  ;;  %s1779_s6 = sshll.u32 %s2096_s21, 6 }
  0x24   : > { %s241_s10 = scalar_lea.hbm %s2805_s1, %s1779_s6  ;;  %s234_s13 = scalar_lea.vmem [#allocation7], %s1778_s5 }
  0x25   : > { %s243_s12 = sshll.u32 %s234_s13, 4  ;;  %s231_s14 = scalar_lea.sflag [#allocation8], %s2191_s29  ;;  %s244_s12 = int_to_ptr.vmem [resolvable:$true] %s243_s12 }
  0x26   : > { %s2032_s15 = scalar_lea.vmem %s244_s12, 64  ;;  %s2108_s8 = smov [#allocation7]  }
  0x27   : > { %p2033_p9 = scmp.ne.s32.totalorder %s244_s12, %s2032_s15  ;;  %s2036_s11 = sshll.u32 %s2108_s8, 4  ;;  %s2037_s11 = int_to_ptr.vmem [resolvable:$false] %s2036_s11 }
  0x28   : > { %s2038_s16 = scalar_lea.vmem %s2037_s11, 128  ;;  %p2039_p12 = scmp.lt.s32.totalorder %s244_s12, %s2037_s11 }
  0x29   : > { %p2034_p10 = pnand %p2033_p9, %p2175_p3  ;;  %p2040_p13 = scmp.lt.s32.totalorder %s2038_s16, %s2032_s15 }
  0x2b   : > { %p2035_p11 = pneg %p2034_p10  ;;  %p2041_p0 = por %p2040_p13, %p2039_p12 }
  0x2d   : > { %p2042_p1 = pnand %p2041_p0, %p2035_p11 }
  0x2f   : > { %2045 = shalt.err (!%p2042_p1)
}
  0x30   : > { %1957 = dma.hbm_to_vmem [thread:$0]  (%p2175_p3), %s241_s10, 64, %s244_s12, %s231_s14  }
  0x31 PF: > { %p1780_p2 = scmp.ge.s32.totalorder %s2100_s22, 1  ;;  %p248_p4 = scmp.lt.s32.totalorder %s2100_s22, 3 }
  0x33   : > { %p249_p5 = pnand %p1780_p2, %p248_p4 }
  0x35   : > { %252 = sbr.rel (%p249_p5) target bundleno = 796 (0x31c), region = 36 }
  0x3a   : > { %s254_s29 = sand.u32 1, %s2084_s18  }
  0x3b   : > { %s1781_s17 = sshll.u32 %s254_s29, 8  ;;  %s255_s3 = scalar_lea.sflag [#allocation6], %s254_s29 }
  0x3c   : > { %s2228_s24 = scalar_lea.vmem [#allocation5], %s1781_s17 }
  0x3d   : > { %2071 = dma.done.wait (%p2182_p7), %s255_s3, 4096  }
  0x3e   : > { %2073 = vsyncadd (%p2182_p7), %s255_s3, 4294963200  ;;  %s1782_s25 = sshll.u32 %s254_s29, 2  ;;  %s264_s26 = scalar_lea.sflag [#allocation8], %s254_s29 }
  0x3f   : > { %s2234_s30 = scalar_lea.vmem [#allocation7], %s1782_s25 }
  0x40   : > { %2075 = dma.done.wait (%p2182_p7), %s264_s26, 64  }
  0x41   : > { %2077 = vsyncadd (%p2182_p7), %s264_s26, 4294967232  ;;  %p1783_p3 = scmp.ne.s32.totalorder %s2092_s20, 0 }
  0x43   : > { %305 = sbr.rel (%p1783_p3) target bundleno = 74 (0x4a), region = 48 }
  0x48   : > { %vm306_vm0 = vcmask 3072   ;;  %v2109_v0 = vmov 0.0  }
  0x49   : > { %307 = vst.msk [vmem:[#allocation2] sm:$0xf] %vm306_vm0, %v2109_v0  ;;  %308 = vst.msk [vmem:[#allocation3] sm:$0xf] %vm306_vm0, %v2109_v0 }
  0x4a PF: > { %v1918_v1 = vld [vmem:[%s2228_s24 + $0x8] sm:$0xff]   ;;  %v2245_v2 = vld [vmem:[%s2806_s2] ss:$0 sm:$0xff]  ;;  %v1791_v3 = vld [vmem:[%s2228_s24] sm:$0xff]   ;;  %vm1302_vm1 = vcmask 130112   ;;  %vm1309_vm2 = vcmask 195712  }
  0x4b   : > { %v1796_v4 = vunpack.c.l.bf16 %v1918_v1  ;;  %v1792_v5 = vunpack.c.l.bf16 %v1791_v3  ;;  %v1797_v6 = vunpack.c.h.bf16 %v1918_v1  ;;  %v1793_v7 = vunpack.c.h.bf16 %v1791_v3  ;;  %v1919_v8 = vld [vmem:[%s2228_s24 + $0x10] sm:$0xff]   ;;  %v1920_v15 = vld [vmem:[%s2228_s24 + $0x18] sm:$0xff]   ;;  %v1921_v20 = vld [vmem:[%s2228_s24 + $0x20] sm:$0xff]   ;;  %p1785_p6 = scmp.ne.s32.totalorder %s2092_s20, 1 }
  0x4c   : > { %v1801_v13 = vunpack.c.h.bf16 %v1919_v8  ;;  %v1800_v14 = vunpack.c.l.bf16 %v1919_v8  ;;  %v1805_v18 = vunpack.c.h.bf16 %v1920_v15  ;;  %v1804_v19 = vunpack.c.l.bf16 %v1920_v15  ;;  %v1922_v25 = vld [vmem:[%s2228_s24 + $0x28] sm:$0xff]   ;;  %v1923_v30 = vld [vmem:[%s2228_s24 + $0x30] sm:$0xff]   ;;  %v1924_v35 = vld [vmem:[%s2228_s24 + $0x38] sm:$0xff]   ;;  %s1668_s27 = sld [smem:[#allocation4]] (!%p1785_p6) }
  0x4d   : > { %v447_v9 = vmul.f32 %v1796_v4, %v2245_v2  ;;  %v445_v10 = vmul.f32 %v1792_v5, %v2245_v2  ;;  %v448_v11 = vmul.f32 %v1797_v6, %v2245_v2  ;;  %v446_v12 = vmul.f32 %v1793_v7, %v2245_v2  ;;  %v1925_v40 = vld [vmem:[%s2228_s24 + $0x40] sm:$0xff]   ;;  %v1926_v45 = vld [vmem:[%s2228_s24 + $0x48] sm:$0xff]   ;;  %v1927_v50 = vld [vmem:[%s2228_s24 + $0x50] sm:$0xff]  }
  0x4e   : > { %v450_v16 = vmul.f32 %v1801_v13, %v2245_v2  ;;  %v449_v17 = vmul.f32 %v1800_v14, %v2245_v2  ;;  %v452_v21 = vmul.f32 %v1805_v18, %v2245_v2  ;;  %v451_v22 = vmul.f32 %v1804_v19, %v2245_v2  ;;  %v1928_v55 = vld [vmem:[%s2228_s24 + $0x58] sm:$0xff]   ;;  %v1929_v60 = vld [vmem:[%s2228_s24 + $0x60] sm:$0xff]   ;;  %v1930_v1 = vld [vmem:[%s2228_s24 + $0x68] sm:$0xff]  }
  0x4f   : > { %513 = vadd.xlane.f32.xlu1 %v447_v9  ;;  %509 = vadd.xlane.f32.xlu0 %v445_v10  ;;  %v1809_v23 = vunpack.c.h.bf16 %v1921_v20  ;;  %v1808_v24 = vunpack.c.l.bf16 %v1921_v20  ;;  %v1813_v28 = vunpack.c.h.bf16 %v1922_v25  ;;  %v1812_v29 = vunpack.c.l.bf16 %v1922_v25  ;;  %v1931_v7 = vld [vmem:[%s2228_s24 + $0x70] sm:$0xff]  }
  0x50   : > { %v1817_v33 = vunpack.c.h.bf16 %v1923_v30  ;;  %v1816_v34 = vunpack.c.l.bf16 %v1923_v30  ;;  %v1821_v38 = vunpack.c.h.bf16 %v1924_v35  ;;  %v1820_v39 = vunpack.c.l.bf16 %v1924_v35 }
  0x51   : > { %v454_v26 = vmul.f32 %v1809_v23, %v2245_v2  ;;  %v453_v27 = vmul.f32 %v1808_v24, %v2245_v2  ;;  %v456_v31 = vmul.f32 %v1813_v28, %v2245_v2  ;;  %v455_v32 = vmul.f32 %v1812_v29, %v2245_v2 }
  0x52   : > { %v458_v36 = vmul.f32 %v1817_v33, %v2245_v2  ;;  %v457_v37 = vmul.f32 %v1816_v34, %v2245_v2  ;;  %v460_v41 = vmul.f32 %v1821_v38, %v2245_v2  ;;  %v459_v42 = vmul.f32 %v1820_v39, %v2245_v2 }
  0x53   : > { %515 = vadd.xlane.f32.xlu1 %v448_v11  ;;  %511 = vadd.xlane.f32.xlu0 %v446_v12  ;;  %v1825_v43 = vunpack.c.h.bf16 %v1925_v40  ;;  %v1824_v44 = vunpack.c.l.bf16 %v1925_v40  ;;  %v1829_v48 = vunpack.c.h.bf16 %v1926_v45  ;;  %v1828_v49 = vunpack.c.l.bf16 %v1926_v45  ;;  %v1932_v12 = vld [vmem:[%s2228_s24 + $0x78] sm:$0xff]  }
  0x54   : > { %v1833_v53 = vunpack.c.h.bf16 %v1927_v50  ;;  %v1832_v54 = vunpack.c.l.bf16 %v1927_v50  ;;  %v1837_v58 = vunpack.c.h.bf16 %v1928_v55  ;;  %v1836_v59 = vunpack.c.l.bf16 %v1928_v55 }
  0x55   : > { %v462_v46 = vmul.f32 %v1825_v43, %v2245_v2  ;;  %v461_v47 = vmul.f32 %v1824_v44, %v2245_v2  ;;  %v464_v51 = vmul.f32 %v1829_v48, %v2245_v2  ;;  %v463_v52 = vmul.f32 %v1828_v49, %v2245_v2 }
  0x56   : > { %v466_v56 = vmul.f32 %v1833_v53, %v2245_v2  ;;  %v465_v57 = vmul.f32 %v1832_v54, %v2245_v2  ;;  %v468_v61 = vmul.f32 %v1837_v58, %v2245_v2  ;;  %v467_v62 = vmul.f32 %v1836_v59, %v2245_v2 }
  0x57   : > { %519 = vadd.xlane.f32.xlu1 %v450_v16  ;;  %517 = vadd.xlane.f32.xlu0 %v449_v17  ;;  %v1841_v63 = vunpack.c.h.bf16 %v1929_v60  ;;  %v1840_v0 = vunpack.c.l.bf16 %v1929_v60  ;;  %v1845_v5 = vunpack.c.h.bf16 %v1930_v1  ;;  %v1844_v6 = vunpack.c.l.bf16 %v1930_v1  ;;  %v1933_v17 = vld [vmem:[%s2228_s24 + $0x80] sm:$0xff]  }
  0x58   : > { %v1849_v10 = vunpack.c.h.bf16 %v1931_v7  ;;  %v1848_v11 = vunpack.c.l.bf16 %v1931_v7  ;;  %v1853_v15 = vunpack.c.h.bf16 %v1932_v12  ;;  %v1852_v16 = vunpack.c.l.bf16 %v1932_v12 }
  0x59   : > { %v470_v3 = vmul.f32 %v1841_v63, %v2245_v2  ;;  %v469_v4 = vmul.f32 %v1840_v0, %v2245_v2  ;;  %v472_v8 = vmul.f32 %v1845_v5, %v2245_v2  ;;  %v471_v9 = vmul.f32 %v1844_v6, %v2245_v2 }
  0x5a   : > { %v474_v13 = vmul.f32 %v1849_v10, %v2245_v2  ;;  %v473_v14 = vmul.f32 %v1848_v11, %v2245_v2  ;;  %v476_v18 = vmul.f32 %v1853_v15, %v2245_v2  ;;  %v475_v19 = vmul.f32 %v1852_v16, %v2245_v2 }
  0x5b   : > { %523 = vadd.xlane.f32.xlu1 %v452_v21  ;;  %521 = vadd.xlane.f32.xlu0 %v451_v22  ;;  %v1857_v20 = vunpack.c.h.bf16 %v1933_v17  ;;  %v1856_v21 = vunpack.c.l.bf16 %v1933_v17  ;;  %v1934_v22 = vld [vmem:[%s2228_s24 + $0x88] sm:$0xff]   ;;  %vm1316_vm3 = vcmask 261312   ;;  %vm1323_vm4 = vcmask 326912  }
  0x5c   : > { %v1861_v25 = vunpack.c.h.bf16 %v1934_v22  ;;  %vm1330_vm5 = vcmask 392512   ;;  %vm1337_vm6 = vcmask 458112   ;;  %vm1344_vm7 = vcmask 523712  }
  0x5d   : > { %v478_v23 = vmul.f32 %v1857_v20, %v2245_v2  ;;  %v477_v24 = vmul.f32 %v1856_v21, %v2245_v2  ;;  %vm1351_vm8 = vcmask 589312   ;;  %vm1358_vm9 = vcmask 654912  }
  0x5e   : > { %v480_v28 = vmul.f32 %v1861_v25, %v2245_v2  ;;  %vm1365_vm10 = vcmask 720512   ;;  %vm1372_vm11 = vcmask 786112   ;;  %vm1379_vm12 = vcmask 851712  }
  0x5f   : > { %527 = vadd.xlane.f32.xlu1 %v454_v26  ;;  %525 = vadd.xlane.f32.xlu0 %v453_v27  ;;  %v1860_v26 = vunpack.c.l.bf16 %v1934_v22  ;;  %v1935_v27 = vld [vmem:[%s2228_s24 + $0x90] sm:$0xff]   ;;  %vm1386_vm13 = vcmask 917312   ;;  %vm1393_vm14 = vcmask 982912   ;;  %vm1400_vm15 = vcmask 1048512  }
  0x60   : > { %v1865_v30 = vunpack.c.h.bf16 %v1935_v27  ;;  %vm1646_vm0 = vcmask 1043456  }
  0x61   : > { %v479_v29 = vmul.f32 %v1860_v26, %v2245_v2 }
  0x62   : > { %v482_v33 = vmul.f32 %v1865_v30, %v2245_v2 }
  0x63   : > { %531 = vadd.xlane.f32.xlu1 %v456_v31  ;;  %529 = vadd.xlane.f32.xlu0 %v455_v32  ;;  %v1864_v31 = vunpack.c.l.bf16 %v1935_v27  ;;  %v1936_v32 = vld [vmem:[%s2228_s24 + $0x98] sm:$0xff]  }
  0x64   : > { %v1869_v35 = vunpack.c.h.bf16 %v1936_v32 }
  0x65   : > { %v481_v34 = vmul.f32 %v1864_v31, %v2245_v2 }
  0x66   : > { %v484_v38 = vmul.f32 %v1869_v35, %v2245_v2 }
  0x67   : > { %535 = vadd.xlane.f32.xlu1 %v458_v36  ;;  %533 = vadd.xlane.f32.xlu0 %v457_v37  ;;  %v1868_v36 = vunpack.c.l.bf16 %v1936_v32  ;;  %v1937_v37 = vld [vmem:[%s2228_s24 + $0xa0] sm:$0xff]  }
  0x68   : > { %v1873_v40 = vunpack.c.h.bf16 %v1937_v37 }
  0x69   : > { %v483_v39 = vmul.f32 %v1868_v36, %v2245_v2  ;;  %v2809_v36 = vlaneseq }
  0x6a   : > { %v486_v43 = vmul.f32 %v1873_v40, %v2245_v2 }
  0x6b   : > { %539 = vadd.xlane.f32.xlu1 %v460_v41  ;;  %537 = vadd.xlane.f32.xlu0 %v459_v42  ;;  %v1872_v41 = vunpack.c.l.bf16 %v1937_v37  ;;  %v1938_v42 = vld [vmem:[%s2228_s24 + $0xa8] sm:$0xff]   ;;  %v2343_v37 = vshrl.u32 %v2809_v36, 7 }
  0x6c   : > { %v1877_v45 = vunpack.c.h.bf16 %v1938_v42 }
  0x6d   : > { %v485_v44 = vmul.f32 %v1872_v41, %v2245_v2  ;;  %2815 = vst [vmem:[#allocation14_spill] sm:$0xff] %v2343_v37 }
  0x6e   : > { %v488_v48 = vmul.f32 %v1877_v45, %v2245_v2 }
  0x6f   : > { %543 = vadd.xlane.f32.xlu1 %v462_v46  ;;  %541 = vadd.xlane.f32.xlu0 %v461_v47  ;;  %v1876_v46 = vunpack.c.l.bf16 %v1938_v42  ;;  %v1939_v47 = vld [vmem:[%s2228_s24 + $0xb0] sm:$0xff]  }
  0x70   : > { %v1881_v50 = vunpack.c.h.bf16 %v1939_v47 }
  0x71   : > { %v487_v49 = vmul.f32 %v1876_v46, %v2245_v2 }
  0x72   : > { %v490_v53 = vmul.f32 %v1881_v50, %v2245_v2 }
  0x73   : > { %547 = vadd.xlane.f32.xlu1 %v464_v51  ;;  %545 = vadd.xlane.f32.xlu0 %v463_v52  ;;  %v1880_v51 = vunpack.c.l.bf16 %v1939_v47  ;;  %v1940_v52 = vld [vmem:[%s2228_s24 + $0xb8] sm:$0xff]  }
  0x74   : > { %v1885_v55 = vunpack.c.h.bf16 %v1940_v52 }
  0x75   : > { %v489_v54 = vmul.f32 %v1880_v51, %v2245_v2 }
  0x76   : > { %v492_v58 = vmul.f32 %v1885_v55, %v2245_v2 }
  0x77   : > { %551 = vadd.xlane.f32.xlu1 %v466_v56  ;;  %549 = vadd.xlane.f32.xlu0 %v465_v57  ;;  %v1884_v56 = vunpack.c.l.bf16 %v1940_v52  ;;  %v1941_v57 = vld [vmem:[%s2228_s24 + $0xc0] sm:$0xff]  }
  0x78   : > { %v1889_v60 = vunpack.c.h.bf16 %v1941_v57 }
  0x79   : > { %v491_v59 = vmul.f32 %v1884_v56, %v2245_v2 }
  0x7a   : > { %v494_v63 = vmul.f32 %v1889_v60, %v2245_v2 }
  0x7b   : > { %555 = vadd.xlane.f32.xlu1 %v468_v61  ;;  %553 = vadd.xlane.f32.xlu0 %v467_v62  ;;  %v1888_v61 = vunpack.c.l.bf16 %v1941_v57  ;;  %v1942_v62 = vld [vmem:[%s2228_s24 + $0xc8] sm:$0xff]   ;;  %v708_v57 = vsub.s32 1, %v2343_v37 }
  0x7c   : > { %v1893_v1 = vunpack.c.h.bf16 %v1942_v62 }
  0x7d   : > { %v493_v0 = vmul.f32 %v1888_v61, %v2245_v2 }
  0x7e   : > { %v496_v5 = vmul.f32 %v1893_v1, %v2245_v2 }
  0x7f   : > { %559 = vadd.xlane.f32.xlu1 %v470_v3  ;;  %557 = vadd.xlane.f32.xlu0 %v469_v4  ;;  %v1892_v3 = vunpack.c.l.bf16 %v1942_v62  ;;  %v1943_v4 = vld [vmem:[%s2228_s24 + $0xd0] sm:$0xff]  }
  0x80   : > { %v1897_v7 = vunpack.c.h.bf16 %v1943_v4 }
  0x81   : > { %v495_v6 = vmul.f32 %v1892_v3, %v2245_v2 }
  0x82   : > { %v498_v10 = vmul.f32 %v1897_v7, %v2245_v2 }
  0x83   : > { %563 = vadd.xlane.f32.xlu1 %v472_v8  ;;  %561 = vadd.xlane.f32.xlu0 %v471_v9  ;;  %v1896_v8 = vunpack.c.l.bf16 %v1943_v4  ;;  %v1944_v9 = vld [vmem:[%s2228_s24 + $0xd8] sm:$0xff]  }
  0x84   : > { %v1901_v12 = vunpack.c.h.bf16 %v1944_v9 }
  0x85   : > { %v497_v11 = vmul.f32 %v1896_v8, %v2245_v2 }
  0x86   : > { %v500_v15 = vmul.f32 %v1901_v12, %v2245_v2  ;;  %v775_v12 = vsub.s32 2, %v2343_v37 }
  0x87   : > { %567 = vadd.xlane.f32.xlu1 %v474_v13  ;;  %565 = vadd.xlane.f32.xlu0 %v473_v14  ;;  %v1900_v13 = vunpack.c.l.bf16 %v1944_v9  ;;  %v1945_v14 = vld [vmem:[%s2228_s24 + $0xe0] sm:$0xff]  }
  0x88   : > { %v1905_v17 = vunpack.c.h.bf16 %v1945_v14 }
  0x89   : > { %v499_v16 = vmul.f32 %v1900_v13, %v2245_v2 }
  0x8a   : > { %v502_v20 = vmul.f32 %v1905_v17, %v2245_v2 }
  0x8b   : > { %571 = vadd.xlane.f32.xlu1 %v476_v18  ;;  %569 = vadd.xlane.f32.xlu0 %v475_v19  ;;  %v1904_v18 = vunpack.c.l.bf16 %v1945_v14  ;;  %v1946_v19 = vld [vmem:[%s2228_s24 + $0xe8] sm:$0xff]  }
  0x8c   : > { %v1909_v22 = vunpack.c.h.bf16 %v1946_v19 }
  0x8d   : > { %v501_v21 = vmul.f32 %v1904_v18, %v2245_v2 }
  0x8e   : > { %v504_v25 = vmul.f32 %v1909_v22, %v2245_v2 }
  0x8f   : > { %575 = vadd.xlane.f32.xlu1 %v478_v23  ;;  %573 = vadd.xlane.f32.xlu0 %v477_v24  ;;  %v1908_v23 = vunpack.c.l.bf16 %v1946_v19  ;;  %v1947_v24 = vld [vmem:[%s2228_s24 + $0xf0] sm:$0xff]  }
  0x90   : > { %v1913_v27 = vunpack.c.h.bf16 %v1947_v24 }
  0x91   : > { %v503_v26 = vmul.f32 %v1908_v23, %v2245_v2 }
  0x92   : > { %v506_v30 = vmul.f32 %v1913_v27, %v2245_v2 }
  0x93   : > { %579 = vadd.xlane.f32.xlu1 %v480_v28  ;;  %577 = vadd.xlane.f32.xlu0 %v479_v29  ;;  %v1912_v28 = vunpack.c.l.bf16 %v1947_v24  ;;  %v1948_v29 = vld [vmem:[%s2228_s24 + $0xf8] sm:$0xff]  }
  0x94   : > { %v1917_v32 = vunpack.c.h.bf16 %v1948_v29 }
  0x95   : > { %v505_v31 = vmul.f32 %v1912_v28, %v2245_v2 }
  0x97   : > { %583 = vadd.xlane.f32.xlu1 %v482_v33  ;;  %581 = vadd.xlane.f32.xlu0 %v481_v34  ;;  %v1916_v33 = vunpack.c.l.bf16 %v1948_v29  ;;  %v508_v34 = vmul.f32 %v1917_v32, %v2245_v2 }
  0x99   : > { %v507_v35 = vmul.f32 %v1916_v33, %v2245_v2 }
  0x9b   : > { %587 = vadd.xlane.f32.xlu1 %v484_v38  ;;  %585 = vadd.xlane.f32.xlu0 %v483_v39  ;;  %v641_v38 = vsub.s32 0, %v2343_v37  ;;  %v2347_v39 = vld [vmem:[%s2234_s30] sm:$0xf] }
  0x9c   : > { %2816 = vst [vmem:[#allocation15_spill] sm:$0xff] %v2347_v39  ;;  %v709_v60 = vrot.slane %v2347_v39, %v708_v57 }
  0x9d   : > { %v642_v42 = vrot.slane %v2347_v39, %v641_v38 }
  0x9f   : > { %591 = vadd.xlane.f32.xlu1 %v486_v43  ;;  %589 = vadd.xlane.f32.xlu0 %v485_v44  ;;  %v2110_v43 = vmov 0  }
  0xa0   : > { %2016 = vset.pattern.permute.xlu0 %v2110_v43  ;;  %2017 = vset.pattern.permute.xlu1 %v2110_v43 }
  0xa3   : > { %595 = vadd.xlane.f32.xlu1 %v488_v48  ;;  %593 = vadd.xlane.f32.xlu0 %v487_v49 }
  0xa7   : > { %599 = vadd.xlane.f32.xlu1 %v490_v53  ;;  %597 = vadd.xlane.f32.xlu0 %v489_v54 }
  0xab   : > { %603 = vadd.xlane.f32.xlu1 %v492_v58  ;;  %601 = vadd.xlane.f32.xlu0 %v491_v59 }
  0xaf   : > { %607 = vadd.xlane.f32.xlu1 %v494_v63  ;;  %605 = vadd.xlane.f32.xlu0 %v493_v0 }
  0xb3   : > { %611 = vadd.xlane.f32.xlu1 %v496_v5  ;;  %609 = vadd.xlane.f32.xlu0 %v495_v6 }
  0xb7   : > { %615 = vadd.xlane.f32.xlu1 %v498_v10  ;;  %613 = vadd.xlane.f32.xlu0 %v497_v11 }
  0xbb   : > { %619 = vadd.xlane.f32.xlu1 %v500_v15  ;;  %617 = vadd.xlane.f32.xlu0 %v499_v16  ;;  %v776_v15 = vrot.slane %v2347_v39, %v775_v12 }
  0xbf   : > { %623 = vadd.xlane.f32.xlu1 %v502_v20  ;;  %621 = vadd.xlane.f32.xlu0 %v501_v21 }
  0xc3   : > { %627 = vadd.xlane.f32.xlu1 %v504_v25  ;;  %625 = vadd.xlane.f32.xlu0 %v503_v26 }
  0xc7   : > { %631 = vadd.xlane.f32.xlu1 %v506_v30  ;;  %629 = vadd.xlane.f32.xlu0 %v505_v31  ;;  %v842_v30 = vsub.s32 3, %v2343_v37 }
  0xc9   : > { %v843_v33 = vrot.slane %v2347_v39, %v842_v30 }
  0xcb   : > { %635 = vadd.xlane.f32.xlu1 %v508_v34  ;;  %633 = vadd.xlane.f32.xlu0 %v507_v35 }
  0xd8   : > { %v2349_v40 = vpop.xlane.xlu1 %513  ;;  %v2351_v41 = vpop.xlane.xlu0 %509 }
  0xdc   : > { %648 = vbcast.lane.b32.xlu1 %v642_v42, 264  ;;  %v2354_v2 = vpop.xlane.xlu1 %515  ;;  %v2356_v44 = vpop.xlane.xlu0 %511 }
  0xe0   : > { %652 = vbcast.lane.b32.xlu1 %v642_v42, 272  ;;  %v2358_v45 = vpop.xlane.xlu1 %519  ;;  %v2360_v46 = vpop.xlane.xlu0 %517 }
  0xe1   : > { %644 = vbcast.lane.b32.xlu0 %v642_v42, 256 }
  0xe4   : > { %656 = vbcast.lane.b32.xlu1 %v642_v42, 280  ;;  %v2362_v47 = vpop.xlane.xlu1 %523  ;;  %v2364_v48 = vpop.xlane.xlu0 %521 }
  0xe5   : > { %660 = vbcast.lane.b32.xlu0 %v642_v42, 288 }
  0xe8   : > { %664 = vbcast.lane.b32.xlu1 %v642_v42, 296  ;;  %v2366_v49 = vpop.xlane.xlu1 %527  ;;  %v2368_v50 = vpop.xlane.xlu0 %525 }
  0xe9   : > { %668 = vbcast.lane.b32.xlu0 %v642_v42, 304 }
  0xec   : > { %672 = vbcast.lane.b32.xlu1 %v642_v42, 312  ;;  %v2370_v51 = vpop.xlane.xlu1 %531  ;;  %v2372_v52 = vpop.xlane.xlu0 %529 }
  0xed   : > { %676 = vbcast.lane.b32.xlu0 %v642_v42, 320 }
  0xf0   : > { %680 = vbcast.lane.b32.xlu1 %v642_v42, 328  ;;  %v2374_v53 = vpop.xlane.xlu1 %535  ;;  %v2376_v54 = vpop.xlane.xlu0 %533 }
  0xf1   : > { %684 = vbcast.lane.b32.xlu0 %v642_v42, 336 }
  0xf4   : > { %688 = vbcast.lane.b32.xlu1 %v642_v42, 344  ;;  %v2378_v55 = vpop.xlane.xlu1 %539  ;;  %v2380_v56 = vpop.xlane.xlu0 %537 }
  0xf5   : > { %692 = vbcast.lane.b32.xlu0 %v642_v42, 352 }
  0xf8   : > { %696 = vbcast.lane.b32.xlu1 %v642_v42, 360  ;;  %v2383_v58 = vpop.xlane.xlu1 %543  ;;  %v2385_v59 = vpop.xlane.xlu0 %541 }
  0xf9   : > { %700 = vbcast.lane.b32.xlu0 %v642_v42, 368 }
  0xfc   : > { %704 = vbcast.lane.b32.xlu1 %v642_v42, 376  ;;  %v2388_v61 = vpop.xlane.xlu1 %547  ;;  %v2390_v62 = vpop.xlane.xlu0 %545 }
  0xfd   : > { %711 = vbcast.lane.b32.xlu0 %v709_v60, 256 }
 0x100   : > { %715 = vbcast.lane.b32.xlu1 %v709_v60, 264  ;;  %v2392_v63 = vpop.xlane.xlu1 %551  ;;  %v2394_v0 = vpop.xlane.xlu0 %549 }
 0x101   : > { %719 = vbcast.lane.b32.xlu0 %v709_v60, 272 }
 0x104   : > { %723 = vbcast.lane.b32.xlu1 %v709_v60, 280  ;;  %v2396_v1 = vpop.xlane.xlu1 %555  ;;  %v2398_v3 = vpop.xlane.xlu0 %553 }
 0x105   : > { %727 = vbcast.lane.b32.xlu0 %v709_v60, 288 }
 0x108   : > { %731 = vbcast.lane.b32.xlu1 %v709_v60, 296  ;;  %v2400_v4 = vpop.xlane.xlu1 %559  ;;  %v2402_v5 = vpop.xlane.xlu0 %557 }
 0x109   : > { %735 = vbcast.lane.b32.xlu0 %v709_v60, 304 }
 0x10c   : > { %739 = vbcast.lane.b32.xlu1 %v709_v60, 312  ;;  %v2404_v6 = vpop.xlane.xlu1 %563  ;;  %v2406_v7 = vpop.xlane.xlu0 %561 }
 0x10d   : > { %743 = vbcast.lane.b32.xlu0 %v709_v60, 320 }
 0x110   : > { %747 = vbcast.lane.b32.xlu1 %v709_v60, 328  ;;  %v2408_v8 = vpop.xlane.xlu1 %567  ;;  %v2410_v9 = vpop.xlane.xlu0 %565 }
 0x111   : > { %751 = vbcast.lane.b32.xlu0 %v709_v60, 336 }
 0x114   : > { %755 = vbcast.lane.b32.xlu1 %v709_v60, 344  ;;  %v2412_v10 = vpop.xlane.xlu1 %571  ;;  %v2414_v11 = vpop.xlane.xlu0 %569 }
 0x115   : > { %2817 = vst [vmem:[#allocation16_spill] sm:$0xff] %v2412_v10  ;;  %2818 = vst [vmem:[#allocation17_spill] sm:$0xff] %v2414_v11  ;;  %759 = vbcast.lane.b32.xlu0 %v709_v60, 352 }
 0x118   : > { %763 = vbcast.lane.b32.xlu1 %v709_v60, 360  ;;  %v2417_v13 = vpop.xlane.xlu1 %575  ;;  %v2419_v14 = vpop.xlane.xlu0 %573 }
 0x119   : > { %767 = vbcast.lane.b32.xlu0 %v709_v60, 368 }
 0x11c   : > { %771 = vbcast.lane.b32.xlu1 %v709_v60, 376  ;;  %v2422_v16 = vpop.xlane.xlu1 %579  ;;  %v2424_v17 = vpop.xlane.xlu0 %577 }
 0x11d   : > { %778 = vbcast.lane.b32.xlu0 %v776_v15, 256 }
 0x120   : > { %782 = vbcast.lane.b32.xlu1 %v776_v15, 264  ;;  %v2426_v18 = vpop.xlane.xlu1 %583  ;;  %v2428_v19 = vpop.xlane.xlu0 %581 }
 0x121   : > { %786 = vbcast.lane.b32.xlu0 %v776_v15, 272 }
 0x124   : > { %790 = vbcast.lane.b32.xlu1 %v776_v15, 280  ;;  %v2430_v20 = vpop.xlane.xlu1 %587  ;;  %v2432_v21 = vpop.xlane.xlu0 %585 }
 0x125   : > { %794 = vbcast.lane.b32.xlu0 %v776_v15, 288 }
 0x128   : > { %798 = vbcast.lane.b32.xlu1 %v776_v15, 296  ;;  %v2434_v22 = vpop.xlane.xlu1 %591  ;;  %v2436_v23 = vpop.xlane.xlu0 %589 }
 0x129   : > { %802 = vbcast.lane.b32.xlu0 %v776_v15, 304 }
 0x12c   : > { %806 = vbcast.lane.b32.xlu1 %v776_v15, 312  ;;  %v2438_v24 = vpop.xlane.xlu1 %595  ;;  %v2440_v25 = vpop.xlane.xlu0 %593 }
 0x12d   : > { %810 = vbcast.lane.b32.xlu0 %v776_v15, 320 }
 0x130   : > { %814 = vbcast.lane.b32.xlu1 %v776_v15, 328  ;;  %v2442_v26 = vpop.xlane.xlu1 %599  ;;  %v2444_v27 = vpop.xlane.xlu0 %597 }
 0x131   : > { %2819 = vst [vmem:[#allocation18_spill] sm:$0xff] %v2442_v26  ;;  %2820 = vst [vmem:[#allocation19_spill] sm:$0xff] %v2444_v27  ;;  %818 = vbcast.lane.b32.xlu0 %v776_v15, 336 }
 0x134   : > { %822 = vbcast.lane.b32.xlu1 %v776_v15, 344  ;;  %v2446_v28 = vpop.xlane.xlu1 %603  ;;  %v2448_v29 = vpop.xlane.xlu0 %601 }
 0x135   : > { %2821 = vst [vmem:[#allocation20_spill] sm:$0xff] %v2446_v28  ;;  %2822 = vst [vmem:[#allocation21_spill] sm:$0xff] %v2448_v29  ;;  %826 = vbcast.lane.b32.xlu0 %v776_v15, 352 }
 0x138   : > { %830 = vbcast.lane.b32.xlu1 %v776_v15, 360  ;;  %v2451_v31 = vpop.xlane.xlu1 %607  ;;  %v2453_v32 = vpop.xlane.xlu0 %605 }
 0x139   : > { %834 = vbcast.lane.b32.xlu0 %v776_v15, 368 }
 0x13c   : > { %838 = vbcast.lane.b32.xlu1 %v776_v15, 376  ;;  %v2456_v34 = vpop.xlane.xlu1 %611  ;;  %v2458_v35 = vpop.xlane.xlu0 %609 }
 0x13d   : > { %845 = vbcast.lane.b32.xlu0 %v843_v33, 256 }
 0x140   : > { %849 = vbcast.lane.b32.xlu1 %v843_v33, 264  ;;  %v2460_v38 = vpop.xlane.xlu1 %615  ;;  %v2462_v42 = vpop.xlane.xlu0 %613 }
 0x141   : > { %853 = vbcast.lane.b32.xlu0 %v843_v33, 272 }
 0x144   : > { %857 = vbcast.lane.b32.xlu1 %v843_v33, 280  ;;  %v2464_v43 = vpop.xlane.xlu1 %619  ;;  %v2466_v57 = vpop.xlane.xlu0 %617 }
 0x145   : > { %861 = vbcast.lane.b32.xlu0 %v843_v33, 288 }
 0x148   : > { %865 = vbcast.lane.b32.xlu1 %v843_v33, 296  ;;  %v2468_v60 = vpop.xlane.xlu1 %623  ;;  %v2470_v12 = vpop.xlane.xlu0 %621 }
 0x149   : > { %2823 = vst [vmem:[#allocation22_spill] sm:$0xff] %v2468_v60  ;;  %2824 = vst [vmem:[#allocation23_spill] sm:$0xff] %v2470_v12  ;;  %869 = vbcast.lane.b32.xlu0 %v843_v33, 304 }
 0x14c   : > { %873 = vbcast.lane.b32.xlu1 %v843_v33, 312  ;;  %v2472_v15 = vpop.xlane.xlu1 %627  ;;  %v2474_v30 = vpop.xlane.xlu0 %625 }
 0x14d   : > { %2825 = vst [vmem:[#allocation24_spill] sm:$0xff] %v2472_v15  ;;  %2826 = vst [vmem:[#allocation25_spill] sm:$0xff] %v2474_v30  ;;  %877 = vbcast.lane.b32.xlu0 %v843_v33, 320 }
 0x150   : > { %881 = vbcast.lane.b32.xlu1 %v843_v33, 328  ;;  %v2476_v36 = vpop.xlane.xlu1 %631  ;;  %v2478_v39 = vpop.xlane.xlu0 %629 }
 0x151   : > { %2827 = vst [vmem:[#allocation26_spill] sm:$0xff] %v2476_v36  ;;  %2828 = vst [vmem:[#allocation27_spill] sm:$0xff] %v2478_v39  ;;  %885 = vbcast.lane.b32.xlu0 %v843_v33, 336 }
 0x154   : > { %889 = vbcast.lane.b32.xlu1 %v843_v33, 344  ;;  %v2480_v28 = vpop.xlane.xlu1 %635  ;;  %v2482_v10 = vpop.xlane.xlu0 %633 }
 0x155   : > { %2829 = vst [vmem:[#allocation28_spill] sm:$0xff] %v2480_v28  ;;  %2830 = vst [vmem:[#allocation29_spill] sm:$0xff] %v2482_v10  ;;  %893 = vbcast.lane.b32.xlu0 %v843_v33, 352 }
 0x158   : > { %897 = vbcast.lane.b32.xlu1 %v843_v33, 360  ;;  %v649_v26 = vpop.permute.xlu1 %648  ;;  %v645_v29 = vpop.permute.xlu0 %644 }
 0x159   : > { %901 = vbcast.lane.b32.xlu0 %v843_v33, 368  ;;  %v971_v15 = vmul.f32 %v645_v29, %v2351_v41  ;;  %v972_v36 = vmul.f32 %v649_v26, %v2356_v44 }
 0x15c   : > { %905 = vbcast.lane.b32.xlu1 %v843_v33, 376  ;;  %v653_v30 = vpop.permute.xlu1 %652  ;;  %v661_v11 = vpop.permute.xlu0 %660 }
 0x15d   : > { %1100 = vperm.xlu0 %2016, %v971_v15   ;;  %v973_v10 = vmul.f32 %v653_v30, %v2349_v40  ;;  %v975_v41 = vmul.f32 %v661_v11, %v2360_v46 }
 0x160   : > { %v657_v39 = vpop.permute.xlu1 %656  ;;  %1103 = vperm.xlu1 %2017, %v972_v36   ;;  %v669_v60 = vpop.permute.xlu0 %668 }
 0x161   : > { %v974_v28 = vmul.f32 %v657_v39, %v2354_v2  ;;  %v977_v36 = vmul.f32 %v669_v60, %v2364_v48 }
 0x163   : > { %1109 = vperm.xlu0 %2016, %v974_v28  }
 0x164   : > { %v665_v27 = vpop.permute.xlu1 %664  ;;  %1106 = vperm.xlu1 %2017, %v973_v10   ;;  %v677_v37 = vpop.permute.xlu0 %676 }
 0x165   : > { %v976_v12 = vmul.f32 %v665_v27, %v2358_v45  ;;  %v979_v10 = vmul.f32 %v677_v37, %v2368_v50 }
 0x167   : > { %1115 = vperm.xlu0 %2016, %v976_v12  }
 0x168   : > { %v673_v29 = vpop.permute.xlu1 %672  ;;  %1112 = vperm.xlu1 %2017, %v975_v41   ;;  %v685_v33 = vpop.permute.xlu0 %684 }
 0x169   : > { %v978_v44 = vmul.f32 %v673_v29, %v2362_v47  ;;  %v981_v26 = vmul.f32 %v685_v33, %v2372_v52 }
 0x16b   : > { %1121 = vperm.xlu0 %2016, %v978_v44  }
 0x16c   : > { %v681_v39 = vpop.permute.xlu1 %680  ;;  %1118 = vperm.xlu1 %2017, %v977_v36   ;;  %v693_v40 = vpop.permute.xlu0 %692 }
 0x16d   : > { %v980_v2 = vmul.f32 %v681_v39, %v2366_v49  ;;  %v983_v28 = vmul.f32 %v693_v40, %v2376_v54 }
 0x16f   : > { %1127 = vperm.xlu0 %2016, %v980_v2  }
 0x170   : > { %v689_v45 = vpop.permute.xlu1 %688  ;;  %1124 = vperm.xlu1 %2017, %v979_v10   ;;  %v701_v46 = vpop.permute.xlu0 %700 }
 0x171   : > { %v982_v11 = vmul.f32 %v689_v45, %v2370_v51  ;;  %v985_v60 = vmul.f32 %v701_v46, %v2380_v56 }
 0x173   : > { %1133 = vperm.xlu0 %2016, %v982_v11  }
 0x174   : > { %v697_v47 = vpop.permute.xlu1 %696  ;;  %1130 = vperm.xlu1 %2017, %v981_v26   ;;  %v712_v48 = vpop.permute.xlu0 %711 }
 0x175   : > { %v984_v27 = vmul.f32 %v697_v47, %v2374_v53  ;;  %v987_v15 = vmul.f32 %v712_v48, %v2385_v59 }
 0x177   : > { %1139 = vperm.xlu0 %2016, %v984_v27  }
 0x178   : > { %v705_v49 = vpop.permute.xlu1 %704  ;;  %1136 = vperm.xlu1 %2017, %v983_v28   ;;  %v720_v37 = vpop.permute.xlu0 %719 }
 0x179   : > { %v986_v50 = vmul.f32 %v705_v49, %v2378_v55  ;;  %v989_v41 = vmul.f32 %v720_v37, %v2390_v62 }
 0x17b   : > { %1145 = vperm.xlu0 %2016, %v986_v50  }
 0x17c   : > { %v716_v51 = vpop.permute.xlu1 %715  ;;  %1142 = vperm.xlu1 %2017, %v985_v60   ;;  %v728_v52 = vpop.permute.xlu0 %727 }
 0x17d   : > { %v988_v12 = vmul.f32 %v716_v51, %v2383_v58  ;;  %v991_v33 = vmul.f32 %v728_v52, %v2394_v0 }
 0x17f   : > { %1151 = vperm.xlu0 %2016, %v988_v12  }
 0x180   : > { %v724_v53 = vpop.permute.xlu1 %723  ;;  %1148 = vperm.xlu1 %2017, %v987_v15   ;;  %v736_v54 = vpop.permute.xlu0 %735 }
 0x181   : > { %v990_v30 = vmul.f32 %v724_v53, %v2388_v61  ;;  %v993_v36 = vmul.f32 %v736_v54, %v2398_v3 }
 0x183   : > { %1157 = vperm.xlu0 %2016, %v990_v30  }
 0x184   : > { %v732_v55 = vpop.permute.xlu1 %731  ;;  %1154 = vperm.xlu1 %2017, %v989_v41   ;;  %v744_v56 = vpop.permute.xlu0 %743 }
 0x185   : > { %v992_v29 = vmul.f32 %v732_v55, %v2392_v63  ;;  %v995_v40 = vmul.f32 %v744_v56, %v2402_v5 }
 0x187   : > { %1163 = vperm.xlu0 %2016, %v992_v29  }
 0x188   : > { %v740_v58 = vpop.permute.xlu1 %739  ;;  %1160 = vperm.xlu1 %2017, %v991_v33   ;;  %v752_v59 = vpop.permute.xlu0 %751 }
 0x189   : > { %v994_v44 = vmul.f32 %v740_v58, %v2396_v1  ;;  %v997_v10 = vmul.f32 %v752_v59, %v2406_v7 }
 0x18b   : > { %1169 = vperm.xlu0 %2016, %v994_v44  }
 0x18c   : > { %v748_v61 = vpop.permute.xlu1 %747  ;;  %1166 = vperm.xlu1 %2017, %v993_v36   ;;  %v760_v62 = vpop.permute.xlu0 %759 }
 0x18d   : > { %v996_v39 = vmul.f32 %v748_v61, %v2400_v4  ;;  %v999_v46 = vmul.f32 %v760_v62, %v2410_v9 }
 0x18f   : > { %1175 = vperm.xlu0 %2016, %v996_v39  }
 0x190   : > { %v756_v63 = vpop.permute.xlu1 %755  ;;  %1172 = vperm.xlu1 %2017, %v995_v40   ;;  %v2510_v0 = vpop.permute.xlu0 %767 }
 0x191   : > { %v998_v2 = vmul.f32 %v756_v63, %v2404_v6 }
 0x193   : > { %1181 = vperm.xlu0 %2016, %v998_v2  }
 0x194   : > { %v764_v1 = vpop.permute.xlu1 %763  ;;  %1178 = vperm.xlu1 %2017, %v997_v10   ;;  %v779_v3 = vpop.permute.xlu0 %778 }
 0x195   : > { %v1000_v45 = vmul.f32 %v764_v1, %v2408_v8  ;;  %v1003_v11 = vmul.f32 %v779_v3, %v2419_v14  ;;  %v2832_v1 = vld [vmem:[#allocation23_spill] sm:$0xff] }
 0x197   : > { %1187 = vperm.xlu0 %2016, %v1000_v45   ;;  %v2833_v45 = vld [vmem:[#allocation14_spill] sm:$0xff] }
 0x198   : > { %v2516_v4 = vpop.permute.xlu1 %771  ;;  %1184 = vperm.xlu1 %2017, %v999_v46   ;;  %v787_v5 = vpop.permute.xlu0 %786 }
 0x199   : > { %v1005_v47 = vmul.f32 %v787_v5, %v2424_v17 }
 0x19c   : > { %v783_v26 = vpop.permute.xlu1 %782  ;;  %1196 = vperm.xlu1 %2017, %v1003_v11   ;;  %v795_v6 = vpop.permute.xlu0 %794 }
 0x19d   : > { %v1004_v7 = vmul.f32 %v783_v26, %v2417_v13  ;;  %v1007_v30 = vmul.f32 %v795_v6, %v2428_v19  ;;  %v2834_v6 = vld [vmem:[#allocation19_spill] sm:$0xff] }
 0x19f   : > { %1199 = vperm.xlu0 %2016, %v1004_v7  }
 0x1a0   : > { %v791_v48 = vpop.permute.xlu1 %790  ;;  %1202 = vperm.xlu1 %2017, %v1005_v47   ;;  %v803_v8 = vpop.permute.xlu0 %802  ;;  %v2835_v47 = vld [vmem:[#allocation22_spill] sm:$0xff] }
 0x1a1   : > { %v1006_v15 = vmul.f32 %v791_v48, %v2422_v16  ;;  %v1009_v16 = vmul.f32 %v803_v8, %v2432_v21 }
 0x1a4   : > { %v799_v27 = vpop.permute.xlu1 %798  ;;  %v811_v9 = vpop.permute.xlu0 %810 }
 0x1a5   : > { %v1008_v29 = vmul.f32 %v799_v27, %v2426_v18 }
 0x1a8   : > { %v807_v28 = vpop.permute.xlu1 %806  ;;  %v819_v49 = vpop.permute.xlu0 %818 }
 0x1a9   : > { %v1013_v63 = vmul.f32 %v819_v49, %v2440_v25 }
 0x1ac   : > { %v815_v37 = vpop.permute.xlu1 %814  ;;  %v2521_v50 = vpop.permute.xlu0 %826 }
 0x1ad   : > { %v1015_v7 = vmul.f32 %v2521_v50, %v2834_v6  ;;  %v2842_v6 = vld [vmem:[#allocation16_spill] sm:$0xff] }
 0x1b0   : > { %v823_v60 = vpop.permute.xlu1 %822  ;;  %v2523_v14 = vpop.permute.xlu0 %834 }
 0x1b1   : > { %v1014_v10 = vmul.f32 %v823_v60, %v2438_v24 }
 0x1b4   : > { %v2525_v51 = vpop.permute.xlu1 %830  ;;  %v846_v52 = vpop.permute.xlu0 %845 }
 0x1b5   : > { %v1019_v13 = vmul.f32 %v846_v52, %v2453_v32  ;;  %v2836_v52 = vld [vmem:[#allocation17_spill] sm:$0xff] }
 0x1b7   : > { %1244 = vperm.xlu0 %2016, %v1019_v13   ;;  %v1001_v13 = vmul.f32 %v2510_v0, %v2836_v52 }
 0x1b8   : > { %v2528_v17 = vpop.permute.xlu1 %838  ;;  %v854_v12 = vpop.permute.xlu0 %853 }
 0x1b9   : > { %v1021_v32 = vmul.f32 %v854_v12, %v2458_v35  ;;  %v1011_v35 = vmul.f32 %v811_v9, %v2436_v23  ;;  %v2837_v12 = vld [vmem:[#allocation25_spill] sm:$0xff] }
 0x1bb   : > { %1205 = vperm.xlu0 %2016, %v1006_v15  }
 0x1bc   : > { %v850_v53 = vpop.permute.xlu1 %849  ;;  %v862_v54 = vpop.permute.xlu0 %861 }
 0x1bd   : > { %v1020_v41 = vmul.f32 %v850_v53, %v2451_v31  ;;  %v1010_v31 = vmul.f32 %v807_v28, %v2430_v20  ;;  %v1023_v44 = vmul.f32 %v862_v54, %v2462_v42  ;;  %v2831_v20 = vlaneseq }
 0x1bf   : > { %1247 = vperm.xlu1 %2017, %v1020_v41   ;;  %1208 = vperm.xlu0 %2016, %v1007_v30   ;;  %v2544_v42 = vand.u32 127, %v2831_v20  ;;  %v2840_v20 = vld [vmem:[#allocation21_spill] sm:$0xff] }
 0x1c0   : > { %v858_v55 = vpop.permute.xlu1 %857  ;;  %v870_v56 = vpop.permute.xlu0 %869 }
 0x1c1   : > { %v1022_v59 = vmul.f32 %v858_v55, %v2456_v34  ;;  %v1012_v34 = vmul.f32 %v815_v37, %v2434_v22  ;;  %v1025_v39 = vmul.f32 %v870_v56, %v2466_v57  ;;  %v1304_v57 = vadd.s32 4294967280, %v2544_v42 }
 0x1c2   : > { %v2560_v46 = vsub.s32 %v2544_v42, %v2833_v45  ;;  %v1311_v5 = vadd.s32 4294967272, %v2544_v42  ;;  %v1318_v24 = vadd.s32 4294967264, %v2544_v42  ;;  %v1325_v49 = vadd.s32 4294967256, %v2544_v42 }
 0x1c3   : > { %1211 = vperm.xlu0 %2016, %v1008_v29   ;;  %1250 = vperm.xlu1 %2017, %v1021_v32   ;;  %v2567_v26 = vsub.s32 %v1304_v57, %v2833_v45  ;;  %v1332_v54 = vadd.s32 4294967248, %v2544_v42  ;;  %v1339_v56 = vadd.s32 4294967240, %v2544_v42 }
 0x1c4   : > { %v866_v33 = vpop.permute.xlu1 %865  ;;  %v878_v58 = vpop.permute.xlu0 %877  ;;  %v2576_v9 = vsub.s32 %v1311_v5, %v2833_v45  ;;  %v2581_v50 = vsub.s32 %v1318_v24, %v2833_v45  ;;  %v2590_v41 = vsub.s32 %v1325_v49, %v2833_v45  ;;  %v1367_v5 = vadd.s32 4294967208, %v2544_v42 }
 0x1c5   : > { %v1024_v61 = vmul.f32 %v866_v33, %v2460_v38  ;;  %v1297_v38 = vadd.s32 4294967288, %v2544_v42  ;;  %v1027_v3 = vmul.f32 %v878_v58, %v2832_v1  ;;  %v1346_v33 = vadd.s32 4294967232, %v2544_v42  ;;  %v2838_v58 = vld [vmem:[#allocation27_spill] sm:$0xff] }
 0x1c6   : > { %v1374_v24 = vadd.s32 4294967200, %v2544_v42  ;;  %v2636_v49 = vsub.s32 %v1367_v5, %v2833_v45 }
 0x1c7   : > { %1214 = vperm.xlu0 %2016, %v1009_v16   ;;  %1253 = vperm.xlu1 %2017, %v1022_v59   ;;  %v2563_v25 = vsub.s32 %v1297_v38, %v2833_v45  ;;  %v2839_v59 = vld [vmem:[#allocation24_spill] sm:$0xff] }
 0x1c8   : > { %v874_v19 = vpop.permute.xlu1 %873  ;;  %v886_v36 = vpop.permute.xlu0 %885 }
 0x1c9   : > { %v1026_v23 = vmul.f32 %v874_v19, %v2464_v43  ;;  %v1029_v15 = vmul.f32 %v886_v36, %v2837_v12  ;;  %v2844_v12 = vld [vmem:[#allocation26_spill] sm:$0xff] }
 0x1cb   : > { %1217 = vperm.xlu0 %2016, %v1010_v31   ;;  %1256 = vperm.xlu1 %2017, %v1023_v44   ;;  %v2600_v44 = vsub.s32 %v1332_v54, %v2833_v45 }
 0x1cc   : > { %v882_v18 = vpop.permute.xlu1 %881  ;;  %v894_v21 = vpop.permute.xlu0 %893 }
 0x1cd   : > { %v1028_v48 = vmul.f32 %v882_v18, %v2835_v47  ;;  %v1031_v16 = vmul.f32 %v894_v21, %v2838_v58  ;;  %v2604_v18 = vsub.s32 %v1339_v56, %v2833_v45  ;;  %v2843_v47 = vld [vmem:[#allocation20_spill] sm:$0xff]  ;;  %v2846_v58 = vld [vmem:[#allocation29_spill] sm:$0xff] }
 0x1cf   : > { %1220 = vperm.xlu0 %2016, %v1011_v35   ;;  %1259 = vperm.xlu1 %2017, %v1024_v61   ;;  %v1353_v61 = vadd.s32 4294967224, %v2544_v42 }
 0x1d0   : > { %v890_v62 = vpop.permute.xlu1 %889  ;;  %v2551_v2 = vpop.permute.xlu0 %901 }
 0x1d1   : > { %v1030_v19 = vmul.f32 %v890_v62, %v2839_v59 }
 0x1d3   : > { %1223 = vperm.xlu0 %2016, %v1012_v34   ;;  %1262 = vperm.xlu1 %2017, %v1025_v39   ;;  %v2610_v39 = vsub.s32 %v1346_v33, %v2833_v45 }
 0x1d4   : > { %v2546_v40 = vpop.permute.xlu1 %897 }
 0x1d7   : > { %1226 = vperm.xlu0 %2016, %v1013_v63   ;;  %1265 = vperm.xlu1 %2017, %v1026_v23   ;;  %v1017_v63 = vmul.f32 %v2523_v14, %v2840_v20  ;;  %v2841_v23 = vld [vmem:[#allocation18_spill] sm:$0xff] }
 0x1d8   : > { %v2553_v22 = vpop.permute.xlu1 %905  ;;  %v1101_v43 = vpop.permute.xlu0 %1100  ;;  %v1016_v38 = vmul.f32 %v2525_v51, %v2841_v23 }
 0x1d9   : > { %v1296_v8 = vrot.slane %v1101_v43, %v2560_v46 }
 0x1db   : > { %1229 = vperm.xlu0 %2016, %v1014_v10   ;;  %1268 = vperm.xlu1 %2017, %v1027_v3   ;;  %v1360_v10 = vadd.s32 4294967216, %v2544_v42  ;;  %v2620_v3 = vsub.s32 %v1353_v61, %v2833_v45 }
 0x1dc   : > { %v1104_v11 = vpop.permute.xlu1 %1103 }
 0x1dd   : > { %v1301_v27 = vrot.slane %v1104_v11, %v2563_v25 }
 0x1de   : > { %v1110_v28 = vpop.permute.xlu0 %1109 }
 0x1df   : > { %v1303_v37 = vsel %vm1302_vm1, %v1301_v27, %v1296_v8  ;;  %1232 = vperm.xlu0 %2016, %v1015_v7   ;;  %1271 = vperm.xlu1 %2017, %v1028_v48   ;;  %v1315_v30 = vrot.slane %v1110_v28, %v2576_v9  ;;  %v1002_v7 = vmul.f32 %v2516_v4, %v2842_v6 }
 0x1e0   : > { %v1107_v60 = vpop.permute.xlu1 %1106  ;;  %v1018_v48 = vmul.f32 %v2528_v17, %v2843_v47  ;;  %v2632_v27 = vsub.s32 %v1360_v10, %v2833_v45 }
 0x1e1   : > { %v1308_v53 = vrot.slane %v1107_v60, %v2567_v26  ;;  %v1381_v60 = vadd.s32 4294967192, %v2544_v42 }
 0x1e2   : > { %v1116_v55 = vpop.permute.xlu0 %1115 }
 0x1e3   : > { %v1310_v29 = vsel %vm1309_vm2, %v1308_v53, %v1303_v37  ;;  %1190 = vperm.xlu0 %2016, %v1001_v13   ;;  %1274 = vperm.xlu1 %2017, %v1029_v15   ;;  %v1329_v36 = vrot.slane %v1116_v55, %v2590_v41  ;;  %v2642_v13 = vsub.s32 %v1374_v24, %v2833_v45  ;;  %v2845_v53 = vld [vmem:[#allocation28_spill] sm:$0xff]  ;;  %v1388_v55 = vadd.s32 4294967184, %v2544_v42 }
 0x1e4   : > { %v1113_v0 = vpop.permute.xlu1 %1112  ;;  %v1317_v32 = vsel %vm1316_vm3, %v1315_v30, %v1310_v29  ;;  %v1032_v15 = vmul.f32 %v2546_v40, %v2844_v12  ;;  %v1034_v54 = vmul.f32 %v2553_v22, %v2845_v53  ;;  %v2652_v29 = vsub.s32 %v1381_v60, %v2833_v45 }
 0x1e5   : > { %v1322_v31 = vrot.slane %v1113_v0, %v2581_v50 }
 0x1e6   : > { %v1122_v35 = vpop.permute.xlu0 %1121 }
 0x1e7   : > { %v1324_v34 = vsel %vm1323_vm4, %v1322_v31, %v1317_v32  ;;  %1277 = vperm.xlu1 %2017, %v1030_v19   ;;  %1280 = vperm.xlu0 %2016, %v1031_v16   ;;  %v1343_v1 = vrot.slane %v1122_v35, %v2604_v18  ;;  %v1395_v32 = vadd.s32 4294967176, %v2544_v42  ;;  %v1033_v16 = vmul.f32 %v2551_v2, %v2846_v58 }
 0x1e8   : > { %v1119_v21 = vpop.permute.xlu1 %1118  ;;  %v1331_v62 = vsel %vm1330_vm5, %v1329_v36, %v1324_v34  ;;  %v2661_v19 = vsub.s32 %v1388_v55, %v2833_v45  ;;  %v2847_v55 = vld [vmem:[#allocation15_spill] sm:$0xff] }
 0x1e9   : > { %v1336_v57 = vrot.slane %v1119_v21, %v2600_v44  ;;  %v2665_v42 = vsub.s32 %v1395_v32, %v2833_v45 }
 0x1ea   : > { %v1128_v43 = vpop.permute.xlu0 %1127 }
 0x1eb   : > { %v1338_v11 = vsel %vm1337_vm6, %v1336_v57, %v1331_v62  ;;  %1235 = vperm.xlu1 %2017, %v1016_v38   ;;  %1238 = vperm.xlu0 %2016, %v1017_v63   ;;  %v1357_v28 = vrot.slane %v1128_v43, %v2620_v3 }
 0x1ec   : > { %v1125_v14 = vpop.permute.xlu1 %1124  ;;  %v1345_v51 = vsel %vm1344_vm7, %v1343_v1, %v1338_v11 }
 0x1ed   : > { %v1350_v8 = vrot.slane %v1125_v14, %v2610_v39 }
 0x1ee   : > { %v1134_v37 = vpop.permute.xlu0 %1133 }
 0x1ef   : > { %v1352_v52 = vsel %vm1351_vm8, %v1350_v8, %v1345_v51  ;;  %1193 = vperm.xlu1 %2017, %v1002_v7   ;;  %1241 = vperm.xlu0 %2016, %v1018_v48   ;;  %v1371_v56 = vrot.slane %v1134_v37, %v2636_v49 }
 0x1f0   : > { %v1131_v4 = vpop.permute.xlu1 %1130  ;;  %v1359_v17 = vsel %vm1358_vm9, %v1357_v28, %v1352_v52 }
 0x1f1   : > { %v1364_v30 = vrot.slane %v1131_v4, %v2632_v27 }
 0x1f2   : > { %v1140_v0 = vpop.permute.xlu0 %1139 }
 0x1f3   : > { %v1366_v33 = vsel %vm1365_vm10, %v1364_v30, %v1359_v17  ;;  %1283 = vperm.xlu1 %2017, %v1032_v15   ;;  %1289 = vperm.xlu0 %2016, %v1034_v54   ;;  %v1385_v31 = vrot.slane %v1140_v0, %v2652_v29 }
 0x1f4   : > { %v1137_v40 = vpop.permute.xlu1 %1136  ;;  %v1373_v22 = vsel %vm1372_vm11, %v1371_v56, %v1366_v33  ;;  %v1654_v56 = vsel %vm1646_vm0, %v2847_v55, 0.0 }
 0x1f5   : > { %v1378_v59 = vrot.slane %v1137_v40, %v2642_v13 }
 0x1f6   : > { %v1146_v36 = vpop.permute.xlu0 %1145 }
 0x1f7   : > { %v1380_v35 = vsel %vm1379_vm12, %v1378_v59, %v1373_v22  ;;  %1286 = vperm.xlu1 %2017, %v1033_v16   ;;  %v1399_v21 = vrot.slane %v1146_v36, %v2665_v42 }
 0x1f8   : > { %v1143_v61 = vpop.permute.xlu1 %1142  ;;  %v1387_v34 = vsel %vm1386_vm13, %v1385_v31, %v1380_v35 }
 0x1f9   : > { %v1392_v2 = vrot.slane %v1143_v61, %v2661_v19 }
 0x1fa   : > { %v1152_v62 = vpop.permute.xlu0 %1151 }
 0x1fb   : > { %v1394_v20 = vsel %vm1393_vm14, %v1392_v2, %v1387_v34  ;;  %v1409_v23 = vrot.slane %v1152_v62, %v2563_v25 }
 0x1fc   : > { %v2673_v63 = vsel %vm1400_vm15, %v1399_v21, %v1394_v20  ;;  %v1149_v45 = vpop.permute.xlu1 %1148 }
 0x1fd   : > { %v1405_v38 = vrot.slane %v1149_v45, %v2560_v46 }
 0x1fe   : > { %v1158_v57 = vpop.permute.xlu0 %1157 }
 0x1ff   : > { %v1410_v10 = vsel %vm1302_vm1, %v1409_v23, %v1405_v38  ;;  %v1419_v5 = vrot.slane %v1158_v57, %v2576_v9 }
 0x200   : > { %v1155_v1 = vpop.permute.xlu1 %1154 }
 0x201   : > { %v1414_v43 = vrot.slane %v1155_v1, %v2567_v26 }
 0x202   : > { %v1164_v11 = vpop.permute.xlu0 %1163 }
 0x203   : > { %v1415_v14 = vsel %vm1309_vm2, %v1414_v43, %v1410_v10  ;;  %v1429_v7 = vrot.slane %v1164_v11, %v2590_v41 }
 0x204   : > { %v1161_v51 = vpop.permute.xlu1 %1160  ;;  %v1420_v24 = vsel %vm1316_vm3, %v1419_v5, %v1415_v14 }
 0x205   : > { %v1424_v6 = vrot.slane %v1161_v51, %v2581_v50 }
 0x206   : > { %v1170_v47 = vpop.permute.xlu0 %1169 }
 0x207   : > { %v1425_v48 = vsel %vm1323_vm4, %v1424_v6, %v1420_v24  ;;  %v1439_v60 = vrot.slane %v1170_v47, %v2604_v18 }
 0x208   : > { %v1167_v8 = vpop.permute.xlu1 %1166  ;;  %v1430_v28 = vsel %vm1330_vm5, %v1429_v7, %v1425_v48 }
 0x209   : > { %v1434_v37 = vrot.slane %v1167_v8, %v2600_v44 }
 0x20a   : > { %v1176_v52 = vpop.permute.xlu0 %1175 }
 0x20b   : > { %v1435_v4 = vsel %vm1337_vm6, %v1434_v37, %v1430_v28  ;;  %v1449_v53 = vrot.slane %v1176_v52, %v2620_v3 }
 0x20c   : > { %v1173_v17 = vpop.permute.xlu1 %1172  ;;  %v1440_v12 = vsel %vm1344_vm7, %v1439_v60, %v1435_v4 }
 0x20d   : > { %v1444_v15 = vrot.slane %v1173_v17, %v2610_v39 }
 0x20e   : > { %v1182_v54 = vpop.permute.xlu0 %1181 }
 0x20f   : > { %v1445_v30 = vsel %vm1351_vm8, %v1444_v15, %v1440_v12  ;;  %v1459_v40 = vrot.slane %v1182_v54, %v2636_v49 }
 0x210   : > { %v1179_v0 = vpop.permute.xlu1 %1178  ;;  %v1450_v32 = vsel %vm1358_vm9, %v1449_v53, %v1445_v30 }
 0x211   : > { %v1454_v33 = vrot.slane %v1179_v0, %v2632_v27 }
 0x212   : > { %1655 = vadd.xlane.f32.xlu0 %v1654_v56  ;;  %v1188_v58 = vpop.permute.xlu0 %1187 }
 0x213   : > { %v1455_v22 = vsel %vm1365_vm10, %v1454_v33, %v1450_v32  ;;  %v1469_v36 = vrot.slane %v1188_v58, %v2652_v29 }
 0x214   : > { %v1185_v16 = vpop.permute.xlu1 %1184  ;;  %v1460_v59 = vsel %vm1372_vm11, %v1459_v40, %v1455_v22 }
 0x215   : > { %v1464_v31 = vrot.slane %v1185_v16, %v2642_v13 }
 0x217   : > { %v1465_v35 = vsel %vm1379_vm12, %v1464_v31, %v1460_v59 }
 0x218   : > { %v2704_v61 = vsel %vm1386_vm13, %v1469_v36, %v1465_v35  ;;  %v1197_v2 = vpop.permute.xlu1 %1196 }
 0x219   : > { %v1484_v60 = vrot.slane %v1197_v2, %v2560_v46 }
 0x21a   : > { %v1200_v34 = vpop.permute.xlu0 %1199 }
 0x21b   : > { %v1488_v37 = vrot.slane %v1200_v34, %v2563_v25 }
 0x21c   : > { %v1203_v62 = vpop.permute.xlu1 %1202 }
 0x21d   : > { %v1493_v17 = vrot.slane %v1203_v62, %v2567_v26  ;;  %v1489_v12 = vsel %vm1302_vm1, %v1488_v37, %v1484_v60 }
 0x21f   : > { %v1494_v32 = vsel %vm1309_vm2, %v1493_v17, %v1489_v12 }
 0x232   : > { %v1245_v21 = vpop.permute.xlu0 %1244 }
 0x233   : > { %v1563_v33 = vrot.slane %v1245_v21, %v2560_v46 }
 0x236   : > { %v1206_v20 = vpop.permute.xlu0 %1205 }
 0x237   : > { %v1498_v15 = vrot.slane %v1206_v20, %v2576_v9 }
 0x239   : > { %v1499_v58 = vsel %vm1316_vm3, %v1498_v15, %v1494_v32 }
 0x23a   : > { %v1248_v45 = vpop.permute.xlu1 %1247  ;;  %v1209_v23 = vpop.permute.xlu0 %1208 }
 0x23b   : > { %v1567_v53 = vrot.slane %v1248_v45, %v2563_v25  ;;  %v1503_v54 = vrot.slane %v1209_v23, %v2581_v50 }
 0x23d   : > { %v1568_v16 = vsel %vm1302_vm1, %v1567_v53, %v1563_v33  ;;  %vm1639_vm1 = vcmask 1041409  }
 0x23e   : > { %v1251_v38 = vpop.permute.xlu1 %1250  ;;  %v1212_v57 = vpop.permute.xlu0 %1211 }
 0x23f   : > { %v1572_v30 = vrot.slane %v1251_v38, %v2567_v26  ;;  %v1508_v55 = vrot.slane %v1212_v57, %v2590_v41  ;;  %v1504_v26 = vsel %vm1323_vm4, %v1503_v54, %v1499_v58 }
 0x241   : > { %v1573_v36 = vsel %vm1309_vm2, %v1572_v30, %v1568_v16  ;;  %v1509_v46 = vsel %vm1330_vm5, %v1508_v55, %v1504_v26  ;;  %vm1641_vm2 = vcmask 1042434   ;;  %v1653_v16 = vld [vmem:[#allocation3] sm:$0xf] }
 0x242   : > { %v1254_v10 = vpop.permute.xlu1 %1253  ;;  %v1215_v1 = vpop.permute.xlu0 %1214 }
 0x243   : > { %v1577_v40 = vrot.slane %v1254_v10, %v2576_v9  ;;  %v1513_v22 = vrot.slane %v1215_v1, %v2600_v44 }
 0x245   : > { %v1514_v21 = vsel %vm1337_vm6, %v1513_v22, %v1509_v46 }
 0x246   : > { %v1257_v43 = vpop.permute.xlu1 %1256  ;;  %v1218_v5 = vpop.permute.xlu0 %1217 }
 0x247   : > { %v1582_v25 = vrot.slane %v1257_v43, %v2581_v50  ;;  %v1518_v59 = vrot.slane %v1218_v5, %v2604_v18  ;;  %v1578_v50 = vsel %vm1316_vm3, %v1577_v40, %v1573_v36  ;;  %vm1643_vm3 = vcmask 1043459  }
 0x249   : > { %v1583_v20 = vsel %vm1323_vm4, %v1582_v25, %v1578_v50  ;;  %v1519_v38 = vsel %vm1344_vm7, %v1518_v59, %v1514_v21  ;;  %vm1651_vm4 = vcmask 3072  }
 0x24a   : > { %v1260_v11 = vpop.permute.xlu1 %1259  ;;  %v1221_v14 = vpop.permute.xlu0 %1220 }
 0x24b   : > { %v1587_v31 = vrot.slane %v1260_v11, %v2590_v41  ;;  %v1523_v9 = vrot.slane %v1221_v14, %v2610_v39 }
 0x24d   : > { %v1524_v1 = vsel %vm1351_vm8, %v1523_v9, %v1519_v38 }
 0x24e   : > { %v1263_v51 = vpop.permute.xlu1 %1262  ;;  %v1224_v24 = vpop.permute.xlu0 %1223 }
 0x24f   : > { %v1592_v35 = vrot.slane %v1263_v51, %v2600_v44  ;;  %v1528_v62 = vrot.slane %v1224_v24, %v2620_v3  ;;  %v1588_v44 = vsel %vm1330_vm5, %v1587_v31, %v1583_v20 }
 0x251   : > { %v1593_v43 = vsel %vm1337_vm6, %v1592_v35, %v1588_v44  ;;  %v1529_v14 = vsel %vm1358_vm9, %v1528_v62, %v1524_v1 }
 0x252   : > { %v1266_v6 = vpop.permute.xlu1 %1265  ;;  %v1227_v7 = vpop.permute.xlu0 %1226 }
 0x253   : > { %v1597_v41 = vrot.slane %v1266_v6, %v2604_v18  ;;  %v1533_v45 = vrot.slane %v1227_v7, %v2632_v27 }
 0x255   : > { %v1598_v7 = vsel %vm1344_vm7, %v1597_v41, %v1593_v43 }
 0x256   : > { %v1269_v47 = vpop.permute.xlu1 %1268  ;;  %v1230_v48 = vpop.permute.xlu0 %1229 }
 0x257   : > { %v1602_v57 = vrot.slane %v1269_v47, %v2610_v39  ;;  %v1538_v10 = vrot.slane %v1230_v48, %v2636_v49  ;;  %v1534_v47 = vsel %vm1365_vm10, %v1533_v45, %v1529_v14 }
 0x25a   : > { %v1272_v8 = vpop.permute.xlu1 %1271  ;;  %v1233_v28 = vpop.permute.xlu0 %1232 }
 0x25b   : > { %v1607_v5 = vrot.slane %v1272_v8, %v2620_v3  ;;  %v1543_v18 = vrot.slane %v1233_v28, %v2642_v13  ;;  %v1603_v8 = vsel %vm1351_vm8, %v1602_v57, %v1598_v7  ;;  %v1539_v28 = vsel %vm1372_vm11, %v1538_v10, %v1534_v47 }
 0x25d   : > { %v1608_v37 = vsel %vm1358_vm9, %v1607_v5, %v1603_v8  ;;  %v1544_v60 = vsel %vm1379_vm12, %v1543_v18, %v1539_v28 }
 0x25e   : > { %v2708_v52 = vpop.permute.xlu1 %1274  ;;  %v1191_v4 = vpop.permute.xlu0 %1190 }
 0x25f   : > { %v1474_v23 = vrot.slane %v1191_v4, %v2661_v19  ;;  %v1612_v51 = vrot.slane %v2708_v52, %v2632_v27 }
 0x261   : > { %v1475_v3 = vsel %vm1393_vm14, %v1474_v23, %v2704_v61  ;;  %v1613_v61 = vsel %vm1365_vm10, %v1612_v51, %v1608_v37 }
 0x262   : > { %v1278_v56 = vpop.permute.xlu1 %1277  ;;  %v1281_v0 = vpop.permute.xlu0 %1280 }
 0x263   : > { %v1617_v48 = vrot.slane %v1278_v56, %v2636_v49  ;;  %v1622_v49 = vrot.slane %v1281_v0, %v2642_v13 }
 0x265   : > { %v1618_v53 = vsel %vm1372_vm11, %v1617_v48, %v1613_v61 }
 0x266   : > { %v1236_v34 = vpop.permute.xlu1 %1235  ;;  %v1239_v2 = vpop.permute.xlu0 %1238  ;;  %v1623_v32 = vsel %vm1379_vm12, %v1622_v49, %v1618_v53 }
 0x267   : > { %v1548_v24 = vrot.slane %v1236_v34, %v2652_v29  ;;  %v1553_v52 = vrot.slane %v1239_v2, %v2661_v19 }
 0x269   : > { %v1549_v12 = vsel %vm1386_vm13, %v1548_v24, %v1544_v60 }
 0x26a   : > { %v1194_v11 = vpop.permute.xlu1 %1193  ;;  %v1242_v6 = vpop.permute.xlu0 %1241  ;;  %v1554_v55 = vsel %vm1393_vm14, %v1553_v52, %v1549_v12 }
 0x26b   : > { %v1479_v39 = vrot.slane %v1194_v11, %v2665_v42  ;;  %v1558_v15 = vrot.slane %v1242_v6, %v2665_v42 }
 0x26d   : > { %v1480_v27 = vsel %vm1400_vm15, %v1479_v39, %v1475_v3 }
 0x26e   : > { %v1284_v4 = vpop.permute.xlu1 %1283  ;;  %v1640_v17 = vsel %vm1639_vm1, %v1480_v27, %v2673_v63  ;;  %v1290_v30 = vpop.permute.xlu0 %1289  ;;  %v1559_v63 = vsel %vm1400_vm15, %v1558_v15, %v1554_v55 }
 0x26f   : > { %v1627_v54 = vrot.slane %v1284_v4, %v2652_v29  ;;  %v1637_v0 = vrot.slane %v1290_v30, %v2665_v42  ;;  %v1642_v22 = vsel %vm1641_vm2, %v1559_v63, %v1640_v17 }
 0x271   : > { %v1628_v13 = vsel %vm1386_vm13, %v1627_v54, %v1623_v32 }
 0x272   : > { %v1287_v56 = vpop.permute.xlu1 %1286 }
 0x273   : > { %v1632_v33 = vrot.slane %v1287_v56, %v2661_v19  ;;  %v637_v19 = vld [vmem:[#allocation2] sm:$0xf] }
 0x275   : > { %v1633_v40 = vsel %vm1393_vm14, %v1632_v33, %v1628_v13 }
 0x276   : > { %v1638_v29 = vsel %vm1400_vm15, %v1637_v0, %v1633_v40 }
 0x277   : > { %v1644_v58 = vsel %vm1643_vm3, %v1638_v29, %v1642_v22 }
 0x278   : > { %v1647_v25 = vsel %vm1646_vm0, %v1644_v58, 0.0 }
 0x279   : > { %1648 = vadd.xlane.f32.xlu1 %v1647_v25 }
 0x29b   : > { %v1656_v26 = vpop.xlane.xlu0 %1655 }
 0x29c   : > { %v1657_v59 = vadd.f32 %v1656_v26, %v1653_v16 }
 0x29e   : > { %1658 = vst.msk [vmem:[#allocation3] sm:$0xf] %vm1651_vm4, %v1657_v59 }
 0x301   : > { %1662 = sbr.rel (%p1785_p6) target bundleno = 796 (0x31c), region = 52 }
 0x302   : > { %v1649_v31 = vpop.xlane.xlu1 %1648 }
 0x303   : > { %v1650_v36 = vadd.f32 %v1649_v31, %v637_v19 }
 0x305   : > { %1652 = vst.msk [vmem:[#allocation2] sm:$0xf] %vm1651_vm4, %v1650_v36 }
 0x306   : > { %v1663_v42 = vld [vmem:[#allocation3] sm:$0xf]  ;;  %v1669_v34 = vstv %s1668_s27 }
 0x307   : > { %v1664_v46 = vmax.f32 %v1663_v42, 1e-09 }
 0x309   : > { %2018 = vrcp.f32 %v1664_v46 }
 0x30c   : > { %v1665_v9 = vld [vmem:[#allocation2] sm:$0xf] }
 0x316   : > { %v2019_v35 = vpop.eup %2018 }
 0x317   : > { %v1667_v2 = vmul.f32 %v2019_v35, %v1665_v9 }
 0x319   : > { %v1670_v50 = vadd.f32 %v1669_v34, %v1667_v2 }
 0x31b   : > { %1671 = vst.msk [vmem:[%s2808_s4] sm:$0xf] %vm1651_vm4, %v1670_v50 }
 0x31c PF: > { %s21_s22 = sadd.s32 1, %s2100_s22   ;;  %s2848_s17 = smov %s2084_s18 }
 0x31d   : > { %p18_p7 = scmp.ge.s32.totalorder %s21_s22, 4   ;;  %s2849_s18 = smov %s2088_s19 }
 0x31e   : > { %s2850_s19 = smov %s2187_s28  ;;  %s2851_s20 = smov %s2096_s21 }
 0x31f   : > { %s2852_s21 = smov %s2854_s23  ;;  %20 = sbr.rel (!%p18_p7) target bundleno = 8 (0x8), region = 102 }
 0x324   :  { %1691 = vsyncpa [#allocation6], 1 }
 0x325   :  { %1693 = vsyncpa [#allocation6 + $0x1], 1 }
 0x326   :  { %1694 = vsyncpa [#allocation8], 1 }
 0x327   :  { %1696 = vsyncpa [#allocation8 + $0x1], 1 }

</bundles_post_ra>
